<compile_context>
chip_gen: v7x
topology: tpu7x:2x2x1
jax: 0.10.0
libtpu: 0.0.40
codegen_flags: <defaults>
</compile_context>

<pallas_src>
import functools

import jax
import jax.numpy as jnp
from jax import lax
from jax.experimental import pallas as pl
from jax.experimental.pallas import tpu as pltpu


def _se_block_deconv_kernel(x_ref, w1_ref, b1_ref, w2_ref, b2_ref,
                            sw1t_ref, sb1_ref, sw2_ref, sb2_ref,
                            out_ref, padbuf_ref, col_ref,
                            *, H, W, C, K, q, pad, enable):
    """Per-batch-element fused forward, internal layout (C, H*W).

    x_ref     : (1, C, HW)       f32 input (flattened NCHW)
    w*_ref    : (C, K*K*C)       bf16 equivalent-conv weights, im2col order
    b*_ref    : (C, 1)           f32
    sw1t_ref  : (C, C//16)       f32 se_conv1 weight (transposed)
    sb1_ref   : (1, C//16)       f32
    sw2_ref   : (C, C//16)       f32 se_conv2 weight
    sb2_ref   : (C, 1)           f32
    out_ref   : (1, C, HW)       f32
    padbuf_ref: (C, 2*pad + HW)  bf16 flat zero-padded image scratch
    col_ref   : (K*K*C, HW)      bf16 im2col scratch
    """
    HW = H * W
    inv_hw = 1.0 / HW
    eps = 1e-5

    # Column-position masks for the horizontal boundary taps (j = p % W).
    jpos = lax.broadcasted_iota(jnp.int32, (C, HW), 1) % W
    col_masks = {}
    for kw in range(K):
        lo, hi = q - kw, W + q - kw
        if lo > 0 or hi < W:
            col_masks[kw] = (jpos >= lo) & (jpos < hi)

    # Zero only the halo strips of the flat padded buffer (interior is fully
    # overwritten below).  Done every grid step -> megacore-safe on v7x.
    zeros_pad = jnp.zeros((C, pad), jnp.bfloat16)
    padbuf_ref[:, 0:pad] = zeros_pad
    padbuf_ref[:, pad + HW:2 * pad + HW] = zeros_pad

    def conv(w_ref, b_ref):
        # Build im2col (K*K*C, HW) from K*K lane-shifted slices of padbuf.
        for t in range(K * K):
            kh, kw = t // K, t % K
            off = (kh - q) * W + (kw - q)
            patch = padbuf_ref[:, pad + off:pad + off + HW]      # (C, HW) bf16
            mask = col_masks.get(kw)
            if mask is not None:
                patch = jnp.where(mask, patch, jnp.zeros_like(patch))
            col_ref[t * C:(t + 1) * C, :] = patch
        # Single MXU matmul: contraction K = K*K*C, bf16 in, f32 accumulate.
        return jnp.dot(w_ref[...], col_ref[...],
                       preferred_element_type=jnp.float32) + b_ref[...]

    def instance_norm(h):
        # Single pass: sum and sum-of-squares over H*W (lane reductions).
        mean = jnp.sum(h, axis=1, keepdims=True) * inv_hw
        msq = jnp.sum(h * h, axis=1, keepdims=True) * inv_hw
        var = msq - mean * mean
        return (h - mean) * lax.rsqrt(var + eps)

    x = x_ref[0]                                            # (C, HW) f32

    # output = relu(IN(convT1(x)))   -- aligned interior write (pad % 128 == 0)
    padbuf_ref[:, pad:pad + HW] = x.astype(jnp.bfloat16)
    h1 = jax.nn.relu(instance_norm(conv(w1_ref, b1_ref)))

    # output = IN(convT2(output))
    padbuf_ref[:, pad:pad + HW] = h1.astype(jnp.bfloat16)
    h2 = instance_norm(conv(w2_ref, b2_ref))

    if enable:
        # Global avg pool -> 1x1 convs -> sigmoid gate.  Tiny; computed with
        # broadcast-multiply + reductions (avoids degenerate N=1 matmuls).
        pooled = jnp.sum(h2, axis=1, keepdims=True) * inv_hw            # (C, 1)
        mid = jnp.sum(sw1t_ref[...] * pooled, axis=0, keepdims=True)    # (1, C16)
        mid = jax.nn.relu(mid + sb1_ref[...])
        gate = jnp.sum(sw2_ref[...] * mid, axis=1, keepdims=True)       # (C, 1)
        gate = jax.nn.sigmoid(gate + sb2_ref[...])
        h2 = h2 * gate

    # Residual add + relu; lane-dense store (HW on the 128-lane axis).
    out_ref[0] = jax.nn.relu(h2 + x).astype(out_ref.dtype)


def se_block_deconv_forward(x_nchw, params, *, kernel=3, stride=1, padding=1,
                            enable=True):
    """Pallas forward. x_nchw: (N, C, H, W) float32 (PyTorch layout)."""
    # Residual `output += x` requires the transposed convs to preserve shape.
    assert stride == 1 and kernel - 2 * padding == 1
    N, C, H, W = x_nchw.shape
    assert H == W            # avg_pool2d(out, out.size(2)) == global pool only if square
    assert C % 16 == 0
    K, P = kernel, padding
    q = K - 1 - P            # padding of the equivalent forward convolution
    HW = H * W
    C16 = C // 16
    # Flat halo wide enough for +-q*(W+1) tap offsets, rounded to 128 lanes so
    # the interior writes are lane-aligned (unmasked vst).
    PAD = max(128, ((q * (W + 1) + 127) // 128) * 128)

    W1, b1, W2, b2, Wse1, bse1, Wse2, bse2 = params   # PyTorch-layout weights

    def conv_t_to_mat(Wt):
        # ConvTranspose2d weight (Cin, Cout, K, K) -> equivalent-conv taps
        # w_eff[kh, kw, ci, co] = Wt[ci, co, K-1-kh, K-1-kw], then flattened to
        # im2col order (Cout, K*K*Cin) and cast to bf16 for the MXU.
        w_eff = jnp.flip(jnp.transpose(Wt, (2, 3, 0, 1)), axis=(0, 1))
        return jnp.transpose(w_eff.reshape(K * K * C, C)).astype(jnp.bfloat16)

    wmat1 = conv_t_to_mat(W1)
    wmat2 = conv_t_to_mat(W2)
    sw1t = jnp.transpose(Wse1[:, :, 0, 0]).astype(jnp.float32)    # (C, C16)
    sw2 = Wse2[:, :, 0, 0].astype(jnp.float32)                    # (C, C16)

    # Free row-major reshape NCHW -> (N, C, H*W): lane-dense, no transpose/pad.
    x_flat = x_nchw.reshape(N, C, HW).astype(jnp.float32)

    kernel_fn = functools.partial(_se_block_deconv_kernel,
                                  H=H, W=W, C=C, K=K, q=q, pad=PAD,
                                  enable=enable)

    # Note: weights are grid-invariant so their re-DMA is elided across steps;
    # double-buffer allocation for them is only ~tens of KiB, so we skip
    # per-spec pipeline_mode tuning and just set an explicit VMEM limit.
    out_flat = pl.pallas_call(
        kernel_fn,
        out_shape=jax.ShapeDtypeStruct((N, C, HW), jnp.float32),
        grid_spec=pltpu.PrefetchScalarGridSpec(
            num_scalar_prefetch=0,
            grid=(N,),
            in_specs=[
                pl.BlockSpec((1, C, HW), lambda n: (n, 0, 0)),        # x
                pl.BlockSpec((C, K * K * C), lambda n: (0, 0)),       # conv1 W
                pl.BlockSpec((C, 1), lambda n: (0, 0)),               # conv1 b
                pl.BlockSpec((C, K * K * C), lambda n: (0, 0)),       # conv2 W
                pl.BlockSpec((C, 1), lambda n: (0, 0)),               # conv2 b
                pl.BlockSpec((C, C16), lambda n: (0, 0)),             # se W1^T
                pl.BlockSpec((1, C16), lambda n: (0, 0)),             # se b1
                pl.BlockSpec((C, C16), lambda n: (0, 0)),             # se W2
                pl.BlockSpec((C, 1), lambda n: (0, 0)),               # se b2
            ],
            out_specs=pl.BlockSpec((1, C, HW), lambda n: (n, 0, 0)),
            scratch_shapes=[
                pltpu.VMEM((C, 2 * PAD + HW), jnp.bfloat16),   # flat padded img
                pltpu.VMEM((K * K * C, HW), jnp.bfloat16),     # im2col buffer
            ],
        ),
        compiler_params=pltpu.CompilerParams(
            dimension_semantics=("parallel",),
            vmem_limit_bytes=32 * 1024 * 1024),
    )(x_flat, wmat1, b1.reshape(C, 1).astype(jnp.float32),
      wmat2, b2.reshape(C, 1).astype(jnp.float32),
      sw1t, bse1.reshape(1, C16).astype(jnp.float32),
      sw2, bse2.reshape(C, 1).astype(jnp.float32))

    return out_flat.reshape(N, C, H, W)      # free reshape back to NCHW


def reference_forward(x, params, *, kernel, stride, padding, enable):
    """Pure-JAX (XLA) reference matching the PyTorch module semantics."""
    W1, b1, W2, b2, Wse1, bse1, Wse2, bse2 = params
    K, P = kernel, padding

    def convT(h, Wt, b):   # ConvTranspose2d, stride=1
        w = jnp.transpose(jnp.flip(Wt, axis=(2, 3)), (1, 0, 2, 3))  # (Cout,Cin,K,K)
        y = lax.conv_general_dilated(
            h, w, window_strides=(1, 1),
            padding=[(K - 1 - P, K - 1 - P)] * 2,
            dimension_numbers=("NCHW", "OIHW", "NCHW"),
            precision=lax.Precision.HIGHEST)
        return y + b[None, :, None, None]

    def inorm(y):
        m = y.mean(axis=(2, 3), keepdims=True)
        v = ((y - m) ** 2).mean(axis=(2, 3), keepdims=True)
        return (y - m) / jnp.sqrt(v + 1e-5)

    out = jax.nn.relu(inorm(convT(x, W1, b1)))
    out = inorm(convT(out, W2, b2))
    if enable:
        se = out.mean(axis=(2, 3), keepdims=True)
        se = jax.nn.relu(jnp.einsum("nihw,oi->nohw", se, Wse1[:, :, 0, 0])
                         + bse1[None, :, None, None])
        se = jax.nn.sigmoid(jnp.einsum("nihw,oi->nohw", se, Wse2[:, :, 0, 0])
                            + bse2[None, :, None, None])
        out = out * se
    return jax.nn.relu(out + x)


if __name__ == "__main__":
    key = jax.random.PRNGKey(0)
    N, C, H, W = 2, 32, 16, 16          # channels >= 16 so channel//16 >= 1
    K, S, P = 3, 1, 1
    C16 = C // 16

    keys = jax.random.split(key, 8)
    x = jax.random.normal(keys[0], (N, C, H, W), jnp.float32)

    std = 0.02                           # mimics weight_init(mean=0, std=0.02)
    W1 = std * jax.random.normal(keys[1], (C, C, K, K), jnp.float32)
    b1 = jnp.zeros((C,), jnp.float32)
    W2 = std * jax.random.normal(keys[2], (C, C, K, K), jnp.float32)
    b2 = jnp.zeros((C,), jnp.float32)
    Wse1 = std * jax.random.normal(keys[3], (C16, C, 1, 1), jnp.float32)
    bse1 = 0.1 * jax.random.normal(keys[4], (C16,), jnp.float32)
    Wse2 = std * jax.random.normal(keys[5], (C, C16, 1, 1), jnp.float32)
    bse2 = 0.1 * jax.random.normal(keys[6], (C,), jnp.float32)
    params = (W1, b1, W2, b2, Wse1, bse1, Wse2, bse2)

    out = se_block_deconv_forward(x, params, kernel=K, stride=S, padding=P,
                                  enable=True)
    out = jax.block_until_ready(out)

    ref = reference_forward(x, params, kernel=K, stride=S, padding=P,
                            enable=True)
    assert out.shape == ref.shape == (N, C, H, W)
    max_err = float(jnp.max(jnp.abs(out - ref)))
    # bf16 matmul operands (f32 accumulation) -> slightly looser tolerance.
    assert jnp.allclose(out, ref, atol=3e-2, rtol=3e-2), f"max_err={max_err}"
    print("KERNEL_OK")
</pallas_src>

<mosaic_0001>
module attributes {stable_mosaic.version = 11 : i64} {
  func.func @_se_block_deconv_kernel(%arg0: i32, %arg1: memref<1x32x256xf32, #tpu.memory_space<vmem>>, %arg2: memref<32x288xbf16, #tpu.memory_space<vmem>>, %arg3: memref<32x1xf32, #tpu.memory_space<vmem>>, %arg4: memref<32x288xbf16, #tpu.memory_space<vmem>>, %arg5: memref<32x1xf32, #tpu.memory_space<vmem>>, %arg6: memref<32x2xf32, #tpu.memory_space<vmem>>, %arg7: memref<1x2xf32, #tpu.memory_space<vmem>>, %arg8: memref<32x2xf32, #tpu.memory_space<vmem>>, %arg9: memref<32x1xf32, #tpu.memory_space<vmem>>, %arg10: memref<1x32x256xf32, #tpu.memory_space<vmem>>, %arg11: memref<32x512xbf16, #tpu.memory_space<vmem>>, %arg12: memref<288x256xbf16, #tpu.memory_space<vmem>>) attributes {dimension_semantics = [#tpu.dimension_semantics<parallel>], iteration_bounds = array<i64: 2>, scalar_prefetch = 0 : i64, scratch_operands = 2 : i64, tpu.core_type = #tpu.core_type<tc>, window_params = [{transform_indices = @transform_0, window_bounds = array<i64: 1, 32, 256>}, {pipeline_mode = #tpu.pipeline_mode<synchronous>, transform_indices = @transform_1, window_bounds = array<i64: 32, 288>}, {pipeline_mode = #tpu.pipeline_mode<synchronous>, transform_indices = @transform_2, window_bounds = array<i64: 32, 1>}, {pipeline_mode = #tpu.pipeline_mode<synchronous>, transform_indices = @transform_3, window_bounds = array<i64: 32, 288>}, {pipeline_mode = #tpu.pipeline_mode<synchronous>, transform_indices = @transform_4, window_bounds = array<i64: 32, 1>}, {pipeline_mode = #tpu.pipeline_mode<synchronous>, transform_indices = @transform_5, window_bounds = array<i64: 32, 2>}, {pipeline_mode = #tpu.pipeline_mode<synchronous>, transform_indices = @transform_6, window_bounds = array<i64: 1, 2>}, {pipeline_mode = #tpu.pipeline_mode<synchronous>, transform_indices = @transform_7, window_bounds = array<i64: 32, 2>}, {pipeline_mode = #tpu.pipeline_mode<synchronous>, transform_indices = @transform_8, window_bounds = array<i64: 32, 1>}, {transform_indices = @transform_9, window_bounds = array<i64: 1, 32, 256>}]} {
    %0 = tpu.iota {dimensions = array<i32: 1>} : vector<32x256xi32>
    %c16_i32 = arith.constant 16 : i32
    %c0_i32 = arith.constant 0 : i32
    %1 = arith.cmpi eq, %c16_i32, %c0_i32 : i32
    %c1_i32 = arith.constant 1 : i32
    %2 = arith.select %1, %c1_i32, %c16_i32 : i32
    %3 = vector.broadcast %2 : i32 to vector<32x256xi32>
    %4 = arith.remsi %0, %3 : vector<32x256xi32>
    %c0_i32_0 = arith.constant 0 : i32
    %5 = vector.broadcast %c0_i32_0 : i32 to vector<32x256xi32>
    %6 = arith.cmpi ne, %4, %5 : vector<32x256xi32>
    %c0_i32_1 = arith.constant 0 : i32
    %7 = vector.broadcast %c0_i32_1 : i32 to vector<32x256xi32>
    %8 = arith.cmpi slt, %4, %7 : vector<32x256xi32>
    %c0_i32_2 = arith.constant 0 : i32
    %9 = arith.cmpi slt, %2, %c0_i32_2 : i32
    %10 = vector.broadcast %9 : i1 to vector<32x256xi1>
    %11 = vector.broadcast %10 : vector<32x256xi1> to vector<32x256xi1>
    %12 = arith.xori %8, %11 : vector<32x256xi1>
    %13 = arith.andi %12, %6 : vector<32x256xi1>
    %14 = vector.broadcast %2 : i32 to vector<32x256xi32>
    %15 = arith.addi %4, %14 : vector<32x256xi32>
    %16 = arith.select %13, %15, %4 : vector<32x256xi1>, vector<32x256xi32>
    %c1_i32_3 = arith.constant 1 : i32
    %17 = vector.broadcast %c1_i32_3 : i32 to vector<32x256xi32>
    %18 = arith.cmpi sge, %16, %17 : vector<32x256xi32>
    %c17_i32 = arith.constant 17 : i32
    %19 = vector.broadcast %c17_i32 : i32 to vector<32x256xi32>
    %20 = arith.cmpi slt, %16, %19 : vector<32x256xi32>
    %21 = arith.andi %18, %20 : vector<32x256xi1>
    %c-1_i32 = arith.constant -1 : i32
    %22 = vector.broadcast %c-1_i32 : i32 to vector<32x256xi32>
    %23 = arith.cmpi sge, %16, %22 : vector<32x256xi32>
    %c15_i32 = arith.constant 15 : i32
    %24 = vector.broadcast %c15_i32 : i32 to vector<32x256xi32>
    %25 = arith.cmpi slt, %16, %24 : vector<32x256xi32>
    %26 = arith.andi %23, %25 : vector<32x256xi1>
    %cst = arith.constant 0.000000e+00 : bf16
    %27 = vector.broadcast %cst : bf16 to vector<32x128xbf16>
    %c0 = arith.constant 0 : index
    %c0_4 = arith.constant 0 : index
    %28 = vector.load %arg11[%c0, %c0_4] : memref<32x512xbf16, #tpu.memory_space<vmem>>, vector<32x128xbf16>
    tpu.vector_store %arg11[%c0, %c0_4], %27 {strides = array<i32>} : memref<32x512xbf16, #tpu.memory_space<vmem>>, vector<32x128xbf16>,
    %c0_5 = arith.constant 0 : index
    %c384 = arith.constant 384 : index
    %29 = vector.load %arg11[%c0_5, %c384] : memref<32x512xbf16, #tpu.memory_space<vmem>>, vector<32x128xbf16>
    tpu.vector_store %arg11[%c0_5, %c384], %27 {strides = array<i32>} : memref<32x512xbf16, #tpu.memory_space<vmem>>, vector<32x128xbf16>,
    %c0_6 = arith.constant 0 : index
    %c0_7 = arith.constant 0 : index
    %c0_8 = arith.constant 0 : index
    %30 = vector.load %arg1[%c0_6, %c0_7, %c0_8] : memref<1x32x256xf32, #tpu.memory_space<vmem>>, vector<1x32x256xf32>
    %31 = vector.shape_cast %30 : vector<1x32x256xf32> to vector<32x256xf32>
    %32 = arith.truncf %31 : vector<32x256xf32> to vector<32x256xbf16>
    %c0_9 = arith.constant 0 : index
    %c128 = arith.constant 128 : index
    %33 = vector.load %arg11[%c0_9, %c128] : memref<32x512xbf16, #tpu.memory_space<vmem>>, vector<32x256xbf16>
    tpu.vector_store %arg11[%c0_9, %c128], %32 {strides = array<i32>} : memref<32x512xbf16, #tpu.memory_space<vmem>>, vector<32x256xbf16>,
    %c0_10 = arith.constant 0 : index
    %c111 = arith.constant 111 : index
    %34 = vector.load %arg11[%c0_10, %c111] : memref<32x512xbf16, #tpu.memory_space<vmem>>, vector<32x256xbf16>
    %cst_11 = arith.constant 0.000000e+00 : bf16
    %35 = vector.broadcast %cst_11 : bf16 to vector<32x256xbf16>
    %36 = arith.select %21, %34, %35 : vector<32x256xi1>, vector<32x256xbf16>
    %c0_12 = arith.constant 0 : index
    %c0_13 = arith.constant 0 : index
    %37 = vector.load %arg12[%c0_12, %c0_13] : memref<288x256xbf16, #tpu.memory_space<vmem>>, vector<32x256xbf16>
    tpu.vector_store %arg12[%c0_12, %c0_13], %36 {strides = array<i32>} : memref<288x256xbf16, #tpu.memory_space<vmem>>, vector<32x256xbf16>,
    %c0_14 = arith.constant 0 : index
    %c112 = arith.constant 112 : index
    %38 = vector.load %arg11[%c0_14, %c112] : memref<32x512xbf16, #tpu.memory_space<vmem>>, vector<32x256xbf16>
    %c32 = arith.constant 32 : index
    %c0_15 = arith.constant 0 : index
    %39 = vector.load %arg12[%c32, %c0_15] : memref<288x256xbf16, #tpu.memory_space<vmem>>, vector<32x256xbf16>
    tpu.vector_store %arg12[%c32, %c0_15], %38 {strides = array<i32>} : memref<288x256xbf16, #tpu.memory_space<vmem>>, vector<32x256xbf16>,
    %c0_16 = arith.constant 0 : index
    %c113 = arith.constant 113 : index
    %40 = vector.load %arg11[%c0_16, %c113] : memref<32x512xbf16, #tpu.memory_space<vmem>>, vector<32x256xbf16>
    %cst_17 = arith.constant 0.000000e+00 : bf16
    %41 = vector.broadcast %cst_17 : bf16 to vector<32x256xbf16>
    %42 = arith.select %26, %40, %41 : vector<32x256xi1>, vector<32x256xbf16>
    %c64 = arith.constant 64 : index
    %c0_18 = arith.constant 0 : index
    %43 = vector.load %arg12[%c64, %c0_18] : memref<288x256xbf16, #tpu.memory_space<vmem>>, vector<32x256xbf16>
    tpu.vector_store %arg12[%c64, %c0_18], %42 {strides = array<i32>} : memref<288x256xbf16, #tpu.memory_space<vmem>>, vector<32x256xbf16>,
    %c0_19 = arith.constant 0 : index
    %c127 = arith.constant 127 : index
    %44 = vector.load %arg11[%c0_19, %c127] : memref<32x512xbf16, #tpu.memory_space<vmem>>, vector<32x256xbf16>
    %cst_20 = arith.constant 0.000000e+00 : bf16
    %45 = vector.broadcast %cst_20 : bf16 to vector<32x256xbf16>
    %46 = arith.select %21, %44, %45 : vector<32x256xi1>, vector<32x256xbf16>
    %c96 = arith.constant 96 : index
    %c0_21 = arith.constant 0 : index
    %47 = vector.load %arg12[%c96, %c0_21] : memref<288x256xbf16, #tpu.memory_space<vmem>>, vector<32x256xbf16>
    tpu.vector_store %arg12[%c96, %c0_21], %46 {strides = array<i32>} : memref<288x256xbf16, #tpu.memory_space<vmem>>, vector<32x256xbf16>,
    %c0_22 = arith.constant 0 : index
    %c128_23 = arith.constant 128 : index
    %48 = vector.load %arg11[%c0_22, %c128_23] : memref<32x512xbf16, #tpu.memory_space<vmem>>, vector<32x256xbf16>
    %c128_24 = arith.constant 128 : index
    %c0_25 = arith.constant 0 : index
    %49 = vector.load %arg12[%c128_24, %c0_25] : memref<288x256xbf16, #tpu.memory_space<vmem>>, vector<32x256xbf16>
    tpu.vector_store %arg12[%c128_24, %c0_25], %48 {strides = array<i32>} : memref<288x256xbf16, #tpu.memory_space<vmem>>, vector<32x256xbf16>,
    %c0_26 = arith.constant 0 : index
    %c129 = arith.constant 129 : index
    %50 = vector.load %arg11[%c0_26, %c129] : memref<32x512xbf16, #tpu.memory_space<vmem>>, vector<32x256xbf16>
    %cst_27 = arith.constant 0.000000e+00 : bf16
    %51 = vector.broadcast %cst_27 : bf16 to vector<32x256xbf16>
    %52 = arith.select %26, %50, %51 : vector<32x256xi1>, vector<32x256xbf16>
    %c160 = arith.constant 160 : index
    %c0_28 = arith.constant 0 : index
    %53 = vector.load %arg12[%c160, %c0_28] : memref<288x256xbf16, #tpu.memory_space<vmem>>, vector<32x256xbf16>
    tpu.vector_store %arg12[%c160, %c0_28], %52 {strides = array<i32>} : memref<288x256xbf16, #tpu.memory_space<vmem>>, vector<32x256xbf16>,
    %c0_29 = arith.constant 0 : index
    %c143 = arith.constant 143 : index
    %54 = vector.load %arg11[%c0_29, %c143] : memref<32x512xbf16, #tpu.memory_space<vmem>>, vector<32x256xbf16>
    %cst_30 = arith.constant 0.000000e+00 : bf16
    %55 = vector.broadcast %cst_30 : bf16 to vector<32x256xbf16>
    %56 = arith.select %21, %54, %55 : vector<32x256xi1>, vector<32x256xbf16>
    %c192 = arith.constant 192 : index
    %c0_31 = arith.constant 0 : index
    %57 = vector.load %arg12[%c192, %c0_31] : memref<288x256xbf16, #tpu.memory_space<vmem>>, vector<32x256xbf16>
    tpu.vector_store %arg12[%c192, %c0_31], %56 {strides = array<i32>} : memref<288x256xbf16, #tpu.memory_space<vmem>>, vector<32x256xbf16>,
    %c0_32 = arith.constant 0 : index
    %c144 = arith.constant 144 : index
    %58 = vector.load %arg11[%c0_32, %c144] : memref<32x512xbf16, #tpu.memory_space<vmem>>, vector<32x256xbf16>
    %c224 = arith.constant 224 : index
    %c0_33 = arith.constant 0 : index
    %59 = vector.load %arg12[%c224, %c0_33] : memref<288x256xbf16, #tpu.memory_space<vmem>>, vector<32x256xbf16>
    tpu.vector_store %arg12[%c224, %c0_33], %58 {strides = array<i32>} : memref<288x256xbf16, #tpu.memory_space<vmem>>, vector<32x256xbf16>,
    %c0_34 = arith.constant 0 : index
    %c145 = arith.constant 145 : index
    %60 = vector.load %arg11[%c0_34, %c145] : memref<32x512xbf16, #tpu.memory_space<vmem>>, vector<32x256xbf16>
    %cst_35 = arith.constant 0.000000e+00 : bf16
    %61 = vector.broadcast %cst_35 : bf16 to vector<32x256xbf16>
    %62 = arith.select %26, %60, %61 : vector<32x256xi1>, vector<32x256xbf16>
    %c256 = arith.constant 256 : index
    %c0_36 = arith.constant 0 : index
    %63 = vector.load %arg12[%c256, %c0_36] : memref<288x256xbf16, #tpu.memory_space<vmem>>, vector<32x256xbf16>
    tpu.vector_store %arg12[%c256, %c0_36], %62 {strides = array<i32>} : memref<288x256xbf16, #tpu.memory_space<vmem>>, vector<32x256xbf16>,
    %c0_37 = arith.constant 0 : index
    %c0_38 = arith.constant 0 : index
    %64 = vector.load %arg2[%c0_37, %c0_38] : memref<32x288xbf16, #tpu.memory_space<vmem>>, vector<32x288xbf16>
    %c0_39 = arith.constant 0 : index
    %c0_40 = arith.constant 0 : index
    %65 = vector.load %arg12[%c0_39, %c0_40] : memref<288x256xbf16, #tpu.memory_space<vmem>>, vector<288x256xbf16>
    %cst_41 = arith.constant dense<0.000000e+00> : vector<32x256xf32>
    %66 = tpu.matmul %64, %65, %cst_41 {dimension_numbers = #tpu.dot_dimension_numbers<[1], [0], [0], [1], [0, 0, 1, 1], [], []>} : vector<32x288xbf16>, vector<288x256xbf16>, vector<32x256xf32> -> vector<32x256xf32>
    %c0_42 = arith.constant 0 : index
    %c0_43 = arith.constant 0 : index
    %67 = vector.load %arg3[%c0_42, %c0_43] : memref<32x1xf32, #tpu.memory_space<vmem>>, vector<32x1xf32>
    %68 = vector.broadcast %67 : vector<32x1xf32> to vector<32x256xf32>
    %69 = arith.addf %66, %68 : vector<32x256xf32>
    %cst_44 = arith.constant dense<0.000000e+00> : vector<32xf32>
    %70 = vector.multi_reduction <add>, %69, %cst_44 [1] : vector<32x256xf32> to vector<32xf32>
    %71 = vector.shape_cast %70 : vector<32xf32> to vector<32x1xf32>
    %cst_45 = arith.constant 3.906250e-03 : f32
    %72 = vector.broadcast %cst_45 : f32 to vector<32x1xf32>
    %73 = arith.mulf %71, %72 : vector<32x1xf32>
    %74 = arith.mulf %69, %69 : vector<32x256xf32>
    %cst_46 = arith.constant dense<0.000000e+00> : vector<32xf32>
    %75 = vector.multi_reduction <add>, %74, %cst_46 [1] : vector<32x256xf32> to vector<32xf32>
    %76 = vector.shape_cast %75 : vector<32xf32> to vector<32x1xf32>
    %cst_47 = arith.constant 3.906250e-03 : f32
    %77 = vector.broadcast %cst_47 : f32 to vector<32x1xf32>
    %78 = arith.mulf %76, %77 : vector<32x1xf32>
    %79 = arith.mulf %73, %73 : vector<32x1xf32>
    %80 = arith.subf %78, %79 : vector<32x1xf32>
    %81 = vector.broadcast %73 : vector<32x1xf32> to vector<32x256xf32>
    %82 = arith.subf %69, %81 : vector<32x256xf32>
    %cst_48 = arith.constant 9.99999974E-6 : f32
    %83 = vector.broadcast %cst_48 : f32 to vector<32x1xf32>
    %84 = arith.addf %80, %83 : vector<32x1xf32>
    %85 = math.rsqrt %84 : vector<32x1xf32>
    %86 = vector.broadcast %85 : vector<32x1xf32> to vector<32x256xf32>
    %87 = arith.mulf %82, %86 : vector<32x256xf32>
    %cst_49 = arith.constant 0.000000e+00 : f32
    %88 = vector.broadcast %cst_49 : f32 to vector<32x256xf32>
    %89 = arith.maximumf %87, %88 : vector<32x256xf32>
    %90 = arith.truncf %89 : vector<32x256xf32> to vector<32x256xbf16>
    %c0_50 = arith.constant 0 : index
    %c128_51 = arith.constant 128 : index
    %91 = vector.load %arg11[%c0_50, %c128_51] : memref<32x512xbf16, #tpu.memory_space<vmem>>, vector<32x256xbf16>
    tpu.vector_store %arg11[%c0_50, %c128_51], %90 {strides = array<i32>} : memref<32x512xbf16, #tpu.memory_space<vmem>>, vector<32x256xbf16>,
    %c0_52 = arith.constant 0 : index
    %c111_53 = arith.constant 111 : index
    %92 = vector.load %arg11[%c0_52, %c111_53] : memref<32x512xbf16, #tpu.memory_space<vmem>>, vector<32x256xbf16>
    %cst_54 = arith.constant 0.000000e+00 : bf16
    %93 = vector.broadcast %cst_54 : bf16 to vector<32x256xbf16>
    %94 = arith.select %21, %92, %93 : vector<32x256xi1>, vector<32x256xbf16>
    %c0_55 = arith.constant 0 : index
    %c0_56 = arith.constant 0 : index
    %95 = vector.load %arg12[%c0_55, %c0_56] : memref<288x256xbf16, #tpu.memory_space<vmem>>, vector<32x256xbf16>
    tpu.vector_store %arg12[%c0_55, %c0_56], %94 {strides = array<i32>} : memref<288x256xbf16, #tpu.memory_space<vmem>>, vector<32x256xbf16>,
    %c0_57 = arith.constant 0 : index
    %c112_58 = arith.constant 112 : index
    %96 = vector.load %arg11[%c0_57, %c112_58] : memref<32x512xbf16, #tpu.memory_space<vmem>>, vector<32x256xbf16>
    %c32_59 = arith.constant 32 : index
    %c0_60 = arith.constant 0 : index
    %97 = vector.load %arg12[%c32_59, %c0_60] : memref<288x256xbf16, #tpu.memory_space<vmem>>, vector<32x256xbf16>
    tpu.vector_store %arg12[%c32_59, %c0_60], %96 {strides = array<i32>} : memref<288x256xbf16, #tpu.memory_space<vmem>>, vector<32x256xbf16>,
    %c0_61 = arith.constant 0 : index
    %c113_62 = arith.constant 113 : index
    %98 = vector.load %arg11[%c0_61, %c113_62] : memref<32x512xbf16, #tpu.memory_space<vmem>>, vector<32x256xbf16>
    %cst_63 = arith.constant 0.000000e+00 : bf16
    %99 = vector.broadcast %cst_63 : bf16 to vector<32x256xbf16>
    %100 = arith.select %26, %98, %99 : vector<32x256xi1>, vector<32x256xbf16>
    %c64_64 = arith.constant 64 : index
    %c0_65 = arith.constant 0 : index
    %101 = vector.load %arg12[%c64_64, %c0_65] : memref<288x256xbf16, #tpu.memory_space<vmem>>, vector<32x256xbf16>
    tpu.vector_store %arg12[%c64_64, %c0_65], %100 {strides = array<i32>} : memref<288x256xbf16, #tpu.memory_space<vmem>>, vector<32x256xbf16>,
    %c0_66 = arith.constant 0 : index
    %c127_67 = arith.constant 127 : index
    %102 = vector.load %arg11[%c0_66, %c127_67] : memref<32x512xbf16, #tpu.memory_space<vmem>>, vector<32x256xbf16>
    %cst_68 = arith.constant 0.000000e+00 : bf16
    %103 = vector.broadcast %cst_68 : bf16 to vector<32x256xbf16>
    %104 = arith.select %21, %102, %103 : vector<32x256xi1>, vector<32x256xbf16>
    %c96_69 = arith.constant 96 : index
    %c0_70 = arith.constant 0 : index
    %105 = vector.load %arg12[%c96_69, %c0_70] : memref<288x256xbf16, #tpu.memory_space<vmem>>, vector<32x256xbf16>
    tpu.vector_store %arg12[%c96_69, %c0_70], %104 {strides = array<i32>} : memref<288x256xbf16, #tpu.memory_space<vmem>>, vector<32x256xbf16>,
    %c0_71 = arith.constant 0 : index
    %c128_72 = arith.constant 128 : index
    %106 = vector.load %arg11[%c0_71, %c128_72] : memref<32x512xbf16, #tpu.memory_space<vmem>>, vector<32x256xbf16>
    %c128_73 = arith.constant 128 : index
    %c0_74 = arith.constant 0 : index
    %107 = vector.load %arg12[%c128_73, %c0_74] : memref<288x256xbf16, #tpu.memory_space<vmem>>, vector<32x256xbf16>
    tpu.vector_store %arg12[%c128_73, %c0_74], %106 {strides = array<i32>} : memref<288x256xbf16, #tpu.memory_space<vmem>>, vector<32x256xbf16>,
    %c0_75 = arith.constant 0 : index
    %c129_76 = arith.constant 129 : index
    %108 = vector.load %arg11[%c0_75, %c129_76] : memref<32x512xbf16, #tpu.memory_space<vmem>>, vector<32x256xbf16>
    %cst_77 = arith.constant 0.000000e+00 : bf16
    %109 = vector.broadcast %cst_77 : bf16 to vector<32x256xbf16>
    %110 = arith.select %26, %108, %109 : vector<32x256xi1>, vector<32x256xbf16>
    %c160_78 = arith.constant 160 : index
    %c0_79 = arith.constant 0 : index
    %111 = vector.load %arg12[%c160_78, %c0_79] : memref<288x256xbf16, #tpu.memory_space<vmem>>, vector<32x256xbf16>
    tpu.vector_store %arg12[%c160_78, %c0_79], %110 {strides = array<i32>} : memref<288x256xbf16, #tpu.memory_space<vmem>>, vector<32x256xbf16>,
    %c0_80 = arith.constant 0 : index
    %c143_81 = arith.constant 143 : index
    %112 = vector.load %arg11[%c0_80, %c143_81] : memref<32x512xbf16, #tpu.memory_space<vmem>>, vector<32x256xbf16>
    %cst_82 = arith.constant 0.000000e+00 : bf16
    %113 = vector.broadcast %cst_82 : bf16 to vector<32x256xbf16>
    %114 = arith.select %21, %112, %113 : vector<32x256xi1>, vector<32x256xbf16>
    %c192_83 = arith.constant 192 : index
    %c0_84 = arith.constant 0 : index
    %115 = vector.load %arg12[%c192_83, %c0_84] : memref<288x256xbf16, #tpu.memory_space<vmem>>, vector<32x256xbf16>
    tpu.vector_store %arg12[%c192_83, %c0_84], %114 {strides = array<i32>} : memref<288x256xbf16, #tpu.memory_space<vmem>>, vector<32x256xbf16>,
    %c0_85 = arith.constant 0 : index
    %c144_86 = arith.constant 144 : index
    %116 = vector.load %arg11[%c0_85, %c144_86] : memref<32x512xbf16, #tpu.memory_space<vmem>>, vector<32x256xbf16>
    %c224_87 = arith.constant 224 : index
    %c0_88 = arith.constant 0 : index
    %117 = vector.load %arg12[%c224_87, %c0_88] : memref<288x256xbf16, #tpu.memory_space<vmem>>, vector<32x256xbf16>
    tpu.vector_store %arg12[%c224_87, %c0_88], %116 {strides = array<i32>} : memref<288x256xbf16, #tpu.memory_space<vmem>>, vector<32x256xbf16>,
    %c0_89 = arith.constant 0 : index
    %c145_90 = arith.constant 145 : index
    %118 = vector.load %arg11[%c0_89, %c145_90] : memref<32x512xbf16, #tpu.memory_space<vmem>>, vector<32x256xbf16>
    %cst_91 = arith.constant 0.000000e+00 : bf16
    %119 = vector.broadcast %cst_91 : bf16 to vector<32x256xbf16>
    %120 = arith.select %26, %118, %119 : vector<32x256xi1>, vector<32x256xbf16>
    %c256_92 = arith.constant 256 : index
    %c0_93 = arith.constant 0 : index
    %121 = vector.load %arg12[%c256_92, %c0_93] : memref<288x256xbf16, #tpu.memory_space<vmem>>, vector<32x256xbf16>
    tpu.vector_store %arg12[%c256_92, %c0_93], %120 {strides = array<i32>} : memref<288x256xbf16, #tpu.memory_space<vmem>>, vector<32x256xbf16>,
    %c0_94 = arith.constant 0 : index
    %c0_95 = arith.constant 0 : index
    %122 = vector.load %arg4[%c0_94, %c0_95] : memref<32x288xbf16, #tpu.memory_space<vmem>>, vector<32x288xbf16>
    %c0_96 = arith.constant 0 : index
    %c0_97 = arith.constant 0 : index
    %123 = vector.load %arg12[%c0_96, %c0_97] : memref<288x256xbf16, #tpu.memory_space<vmem>>, vector<288x256xbf16>
    %cst_98 = arith.constant dense<0.000000e+00> : vector<32x256xf32>
    %124 = tpu.matmul %122, %123, %cst_98 {dimension_numbers = #tpu.dot_dimension_numbers<[1], [0], [0], [1], [0, 0, 1, 1], [], []>} : vector<32x288xbf16>, vector<288x256xbf16>, vector<32x256xf32> -> vector<32x256xf32>
    %c0_99 = arith.constant 0 : index
    %c0_100 = arith.constant 0 : index
    %125 = vector.load %arg5[%c0_99, %c0_100] : memref<32x1xf32, #tpu.memory_space<vmem>>, vector<32x1xf32>
    %126 = vector.broadcast %125 : vector<32x1xf32> to vector<32x256xf32>
    %127 = arith.addf %124, %126 : vector<32x256xf32>
    %cst_101 = arith.constant dense<0.000000e+00> : vector<32xf32>
    %128 = vector.multi_reduction <add>, %127, %cst_101 [1] : vector<32x256xf32> to vector<32xf32>
    %129 = vector.shape_cast %128 : vector<32xf32> to vector<32x1xf32>
    %cst_102 = arith.constant 3.906250e-03 : f32
    %130 = vector.broadcast %cst_102 : f32 to vector<32x1xf32>
    %131 = arith.mulf %129, %130 : vector<32x1xf32>
    %132 = arith.mulf %127, %127 : vector<32x256xf32>
    %cst_103 = arith.constant dense<0.000000e+00> : vector<32xf32>
    %133 = vector.multi_reduction <add>, %132, %cst_103 [1] : vector<32x256xf32> to vector<32xf32>
    %134 = vector.shape_cast %133 : vector<32xf32> to vector<32x1xf32>
    %cst_104 = arith.constant 3.906250e-03 : f32
    %135 = vector.broadcast %cst_104 : f32 to vector<32x1xf32>
    %136 = arith.mulf %134, %135 : vector<32x1xf32>
    %137 = arith.mulf %131, %131 : vector<32x1xf32>
    %138 = arith.subf %136, %137 : vector<32x1xf32>
    %139 = vector.broadcast %131 : vector<32x1xf32> to vector<32x256xf32>
    %140 = arith.subf %127, %139 : vector<32x256xf32>
    %cst_105 = arith.constant 9.99999974E-6 : f32
    %141 = vector.broadcast %cst_105 : f32 to vector<32x1xf32>
    %142 = arith.addf %138, %141 : vector<32x1xf32>
    %143 = math.rsqrt %142 : vector<32x1xf32>
    %144 = vector.broadcast %143 : vector<32x1xf32> to vector<32x256xf32>
    %145 = arith.mulf %140, %144 : vector<32x256xf32>
    %cst_106 = arith.constant dense<0.000000e+00> : vector<32xf32>
    %146 = vector.multi_reduction <add>, %145, %cst_106 [1] : vector<32x256xf32> to vector<32xf32>
    %147 = vector.shape_cast %146 : vector<32xf32> to vector<32x1xf32>
    %cst_107 = arith.constant 3.906250e-03 : f32
    %148 = vector.broadcast %cst_107 : f32 to vector<32x1xf32>
    %149 = arith.mulf %147, %148 : vector<32x1xf32>
    %c0_108 = arith.constant 0 : index
    %c0_109 = arith.constant 0 : index
    %150 = vector.load %arg6[%c0_108, %c0_109] : memref<32x2xf32, #tpu.memory_space<vmem>>, vector<32x2xf32>
    %151 = vector.broadcast %149 : vector<32x1xf32> to vector<32x2xf32>
    %152 = arith.mulf %150, %151 : vector<32x2xf32>
    %cst_110 = arith.constant dense<0.000000e+00> : vector<2xf32>
    %153 = vector.multi_reduction <add>, %152, %cst_110 [0] : vector<32x2xf32> to vector<2xf32>
    %154 = vector.shape_cast %153 : vector<2xf32> to vector<1x2xf32>
    %c0_111 = arith.constant 0 : index
    %c0_112 = arith.constant 0 : index
    %155 = vector.load %arg7[%c0_111, %c0_112] : memref<1x2xf32, #tpu.memory_space<vmem>>, vector<1x2xf32>
    %156 = arith.addf %154, %155 : vector<1x2xf32>
    %cst_113 = arith.constant 0.000000e+00 : f32
    %157 = vector.broadcast %cst_113 : f32 to vector<1x2xf32>
    %158 = arith.maximumf %156, %157 : vector<1x2xf32>
    %c0_114 = arith.constant 0 : index
    %c0_115 = arith.constant 0 : index
    %159 = vector.load %arg8[%c0_114, %c0_115] : memref<32x2xf32, #tpu.memory_space<vmem>>, vector<32x2xf32>
    %160 = vector.broadcast %158 : vector<1x2xf32> to vector<32x2xf32>
    %161 = arith.mulf %159, %160 : vector<32x2xf32>
    %cst_116 = arith.constant dense<0.000000e+00> : vector<32xf32>
    %162 = vector.multi_reduction <add>, %161, %cst_116 [1] : vector<32x2xf32> to vector<32xf32>
    %163 = vector.shape_cast %162 : vector<32xf32> to vector<32x1xf32>
    %c0_117 = arith.constant 0 : index
    %c0_118 = arith.constant 0 : index
    %164 = vector.load %arg9[%c0_117, %c0_118] : memref<32x1xf32, #tpu.memory_space<vmem>>, vector<32x1xf32>
    %165 = arith.addf %163, %164 : vector<32x1xf32>
    %166 = arith.negf %165 : vector<32x1xf32>
    %167 = math.exp %166 : vector<32x1xf32>
    %cst_119 = arith.constant 1.000000e+00 : f32
    %168 = vector.broadcast %cst_119 : f32 to vector<32x1xf32>
    %169 = arith.addf %168, %167 : vector<32x1xf32>
    %170 = arith.divf %168, %169 : vector<32x1xf32>
    %171 = vector.broadcast %170 : vector<32x1xf32> to vector<32x256xf32>
    %172 = arith.mulf %145, %171 : vector<32x256xf32>
    %173 = arith.addf %172, %31 : vector<32x256xf32>
    %cst_120 = arith.constant 0.000000e+00 : f32
    %174 = vector.broadcast %cst_120 : f32 to vector<32x256xf32>
    %175 = arith.maximumf %173, %174 : vector<32x256xf32>
    %c0_121 = arith.constant 0 : index
    %c0_122 = arith.constant 0 : index
    %c0_123 = arith.constant 0 : index
    %176 = vector.load %arg10[%c0_121, %c0_122, %c0_123] : memref<1x32x256xf32, #tpu.memory_space<vmem>>, vector<1x32x256xf32>
    %177 = vector.shape_cast %176 : vector<1x32x256xf32> to vector<32x256xf32>
    %178 = vector.shape_cast %175 : vector<32x256xf32> to vector<1x32x256xf32>
    tpu.vector_store %arg10[%c0_121, %c0_122, %c0_123], %178 {strides = array<i32>} : memref<1x32x256xf32, #tpu.memory_space<vmem>>, vector<1x32x256xf32>,
    return
  }
  func.func @transform_0(%arg0: i32) -> (i32, i32, i32) {
    %c0_i32 = arith.constant 0 : i32
    %c0_i32_0 = arith.constant 0 : i32
    %c0_i32_1 = arith.constant 0 : i32
    return %arg0, %c0_i32, %c0_i32_0 : i32, i32, i32
  }
  func.func @transform_1(%arg0: i32) -> (i32, i32) {
    %c0_i32 = arith.constant 0 : i32
    %c0_i32_0 = arith.constant 0 : i32
    %c0_i32_1 = arith.constant 0 : i32
    return %c0_i32, %c0_i32_0 : i32, i32
  }
  func.func @transform_2(%arg0: i32) -> (i32, i32) {
    %c0_i32 = arith.constant 0 : i32
    %c0_i32_0 = arith.constant 0 : i32
    %c0_i32_1 = arith.constant 0 : i32
    return %c0_i32, %c0_i32_0 : i32, i32
  }
  func.func @transform_3(%arg0: i32) -> (i32, i32) {
    %c0_i32 = arith.constant 0 : i32
    %c0_i32_0 = arith.constant 0 : i32
    %c0_i32_1 = arith.constant 0 : i32
    return %c0_i32, %c0_i32_0 : i32, i32
  }
  func.func @transform_4(%arg0: i32) -> (i32, i32) {
    %c0_i32 = arith.constant 0 : i32
    %c0_i32_0 = arith.constant 0 : i32
    %c0_i32_1 = arith.constant 0 : i32
    return %c0_i32, %c0_i32_0 : i32, i32
  }
  func.func @transform_5(%arg0: i32) -> (i32, i32) {
    %c0_i32 = arith.constant 0 : i32
    %c0_i32_0 = arith.constant 0 : i32
    %c0_i32_1 = arith.constant 0 : i32
    return %c0_i32, %c0_i32_0 : i32, i32
  }
  func.func @transform_6(%arg0: i32) -> (i32, i32) {
    %c0_i32 = arith.constant 0 : i32
    %c0_i32_0 = arith.constant 0 : i32
    %c0_i32_1 = arith.constant 0 : i32
    return %c0_i32, %c0_i32_0 : i32, i32
  }
  func.func @transform_7(%arg0: i32) -> (i32, i32) {
    %c0_i32 = arith.constant 0 : i32
    %c0_i32_0 = arith.constant 0 : i32
    %c0_i32_1 = arith.constant 0 : i32
    return %c0_i32, %c0_i32_0 : i32, i32
  }
  func.func @transform_8(%arg0: i32) -> (i32, i32) {
    %c0_i32 = arith.constant 0 : i32
    %c0_i32_0 = arith.constant 0 : i32
    %c0_i32_1 = arith.constant 0 : i32
    return %c0_i32, %c0_i32_0 : i32, i32
  }
  func.func @transform_9(%arg0: i32) -> (i32, i32, i32) {
    %c0_i32 = arith.constant 0 : i32
    %c0_i32_0 = arith.constant 0 : i32
    %c0_i32_1 = arith.constant 0 : i32
    return %arg0, %c0_i32, %c0_i32_0 : i32, i32, i32
  }
}

</mosaic_0001>

<bundles_post_ra>
// kernel: tpu_custom_call.1
= control target key start
LH: loop header
LB: loop body
LE: loop exit
PB: predicated region body
PF: predicated region fallthrough
CT: control target
= control target key end

     0   :  { %14 = vsyncpa [#allocation5], 0  ;;  %s3181_s0 = inlined_call_operand.vmem [shape: f32[2,32,256], index: 0, kind: input, shape index: {}]   ;;  %s3182_s1 = inlined_call_operand.hbm [shape: bf16[32,288], index: 1, kind: input, shape index: {}]   ;;  %s3183_s2 = inlined_call_operand.vmem [shape: f32[32,1], index: 2, kind: input, shape index: {}]   ;;  %s3184_s3 = inlined_call_operand.vmem [shape: bf16[32,288], index: 3, kind: input, shape index: {}]   ;;  %s3185_s4 = inlined_call_operand.vmem [shape: f32[32,1], index: 4, kind: input, shape index: {}]   ;;  %s3186_s5 = inlined_call_operand.vmem [shape: f32[32,2], index: 5, kind: input, shape index: {}]   ;;  %s3187_s6 = inlined_call_operand.vmem [shape: f32[1,2], index: 6, kind: input, shape index: {}]   ;;  %s3188_s7 = inlined_call_operand.vmem [shape: f32[32,2], index: 7, kind: input, shape index: {}]   ;;  %s3189_s8 = inlined_call_operand.vmem [shape: f32[32,1], index: 8, kind: input, shape index: {}]   ;;  %s3190_s9 = inlined_call_operand.hbm [shape: f32[2,32,256], index: 9, kind: output, shape index: {}]  }
   0x1   :  { %15 = vsyncpa [#allocation6], 0 }
   0x2   :  { %17 = vsyncpa [#allocation6 + $0x1], 0  ;;  %s2374_s30 = smov 0   ;;  %s2376_s10 = smov 0  }
   0x3   :  { %s2378_s11 = smov 0   ;;  %s2380_s12 = smov 0  }
   0x4 LB: > { %s2395_s13 = sadd.s32 4294967295, %s2308_s12   ;;  %s1966_s14 = sadd.s32 4294967294, %s2308_s12   ;;  %s2308_s12 = sphi %s2380_s12, %s3234_s12   ;;  %s2304_s11 = sphi %s2378_s11, %s3233_s11   ;;  %s2300_s10 = sphi %s2376_s10, %s3232_s10   ;;  %s2296_s30 = sphi %s2374_s30, %s3231_s30  }
   0x5   : > { %s2399_s15 = sadd.s32 1, %s2308_s12   ;;  %s224_s16 = sadd.s32 1, %s2304_s11 }
   0x6   : > { %s221_s17 = ssub.s32 %s2308_s12, %s2399_s15  ;;  %p234_p0 = scmp.ne.s32.totalorder %s2304_s11, %s2300_s10 }
   0x7   : > { %p222_p1 = scmp.eq.s32.totalorder %s221_s17, 0  ;;  %p235_p2 = scmp.eq.s32.totalorder %s2395_s13, 1 }
   0x8   : > { %p240_p3 = scmp.ne.s32.totalorder %s2300_s10, %s2296_s30  ;;  %p241_p4 = scmp.eq.s32.totalorder %s1966_s14, 1 }
   0x9   : > { %s2410_s18 = scalar_select %p222_p1, %s2304_s11, %s224_s16  }
   0xa   : > { %p2412_p5 = por %p235_p2, %p234_p0  ;;  %p2416_p6 = por %p241_p4, %p240_p3 }
   0xb   : > { %p1967_p7 = scmp.ge.s32.totalorder %s2308_s12, 1  ;;  %p248_p8 = scmp.lt.s32.totalorder %s2308_s12, 3 }
   0xc   : > { %s3205_s19 = scalar_select %p2412_p5, 1, 0 }
   0xd   : > { %s3206_s20 = scalar_select %p2416_p6, 1, 0 }
   0xe   : > { %p3191_p9 = scmp.eq.s32.totalorder %s2395_s13, 0  ;;  %p2423_p10 = pnand %p1967_p7, %p248_p8 }
   0xf   : > { %s2310_s22 = smov [#allocation4]   ;;  %s2214_s27 = scalar_lea.hbm %s3182_s1, 768 }
  0x10   : > { %s3207_s21 = scalar_select %p2423_p10, 1, 0 }
  0x11   : > { %s260_s23 = sshll.u32 %s2310_s22, 4  ;;  %p2040_p11 = pneg %p2423_p10  ;;  %s261_s23 = int_to_ptr.vmem [resolvable:$true] %s260_s23 }
  0x12   : > { %p2215_p13 = scmp.ne.s32.totalorder %s3182_s1, %s2214_s27  ;;  %p2221_p3 = scmp.lt.u32.totalorder %s2214_s27, %s3182_s1 }
  0x13   : > { %p2431_p12 = pnand %p3191_p9, %p2040_p11 }
  0x15   : > { %p2216_p0 = pneg %p2431_p12 }
  0x17   : > { %p2217_p1 = pnand %p2216_p0, %p2215_p13 }
  0x19   : > { %p2218_p2 = pneg %p2217_p1 }
  0x1b   : > { %p2223_p4 = pnand %p2221_p3, %p2218_p2 }
  0x1d   : > { %2226 = shalt.err (!%p2223_p4)
}
  0x1e   : > { %s2227_s17 = scalar_lea.vmem %s261_s23, 768  ;;  %p2235_p9 = scmp.lt.s32.totalorder %s261_s23, %s261_s23 }
  0x1f   : > { %p2228_p7 = scmp.ne.s32.totalorder %s261_s23, %s2227_s17  ;;  %p2236_p6 = scmp.lt.s32.totalorder %s2227_s17, %s2227_s17 }
  0x21   : > { %p2230_p8 = pnand %p2228_p7, %p2216_p0  ;;  %p2237_p5 = por %p2236_p6, %p2235_p9 }
  0x23   : > { %p2231_p11 = pneg %p2230_p8 }
  0x25   : > { %p2238_p10 = pnand %p2237_p5, %p2231_p11 }
  0x27   : > { %2241 = shalt.err (!%p2238_p10)
}
  0x28   : > { %s2311_s22 = smov 192   ;;  %s2312_s25 = smov 12  }
  0x29   : > { %2043 = dma.hbm_to_vmem [thread:$0]  (!%p2431_p12), %s3182_s1, 768, %s261_s23, [#allocation5], %s2311_s22, %s2311_s22, %s2312_s25  }
  0x2a   : > { %p3209_p13 = scmp.ne.s32.totalorder %s3207_s21, 0 }
  0x2b   : > { %v349_v0 = vlaneseq (!%p3209_p13)  ;;  %p3210_p0 = scmp.eq.s32.totalorder (!%p3209_p13), %s2395_s13, 0 }
  0x2c   : > { %305 = sbr.rel (%p3209_p13) target bundleno = 1920 (0x780), region = 56 }
  0x33   : > { %2287 = dma.done.wait (%p3210_p0), [#allocation5], 768   ;;  %p3211_p1 = pmov %p3210_p0 }
  0x34   : > { %v2313_v1 = vmov 0   ;;  %v350_v2 = vand.u32 127, %v349_v0  ;;  %v417_v3 = vshrl.u32 %v349_v0, 7  ;;  %s2314_s21 = smov 111   ;;  %p341_p5 = scmp.lt.s32.totalorder %s2395_s13, 1  ;;  %vm428_vm6 = vcmask 908288  }
  0x35   : > { %2289 = vsyncadd (%p3211_p1), [#allocation5], 4294966528  ;;  %2126 = vset.pattern.permute.xlu0 %v2313_v1  ;;  %2127 = vset.pattern.permute.xlu1 %v2313_v1  ;;  %s3199_s23 = smov 113   ;;  %s3201_s27 = smov 127   ;;  %vm527_vm9 = vcmask 924672   ;;  %vm579_vm12 = vcmask 1039360  }
  0x36   : > { %v351_v4 = vadd.s32 128, %v350_v2  ;;  %v356_v5 = vand.u32 15, %v350_v2  ;;  %v2459_v7 = vsub.s32 0, %v417_v3  ;;  %v422_v8 = vsub.s32 4, %v417_v3  ;;  %s342_s24 = scalar_select %p341_p5, %s2395_s13, 1 }
  0x37   : > { %s2317_s22 = smov 1   ;;  %s2318_s25 = smov 15   ;;  %v2160_v62 = vld [vmem:[#allocation4 + $0x4] ss:$12 sps:$4 sm:$0xff]  }
  0x38   : > { %v363_v6 = vand.u32 15, %v351_v4  ;;  %vm376_vm0 = vcmp.ge.s32.totalorder %v356_v5, 1  ;;  %vm384_vm1 = vcmp.lt.s32.totalorder %v356_v5, 15  ;;  %s2000_s29 = sshll.u32 %s342_s24, 6  ;;  %s2319_s26 = smov 17   ;;  %953 = vmatprep.mubr.bf16.mxu0 %v2160_v62 }
  0x39   : > { %s2476_s17 = scalar_lea.vmem %s3181_s0, %s2000_s29  ;;  %s2320_s28 = smov 16  }
  0x3a   : > { %vm377_vm2 = vcmp.ge.s32.totalorder %v363_v6, 1  ;;  %vm385_vm3 = vcmp.lt.s32.totalorder %v363_v6, 15  ;;  %v392_v15 = vld [vmem:[%s2476_s17] sm:$0xff]  ;;  %v394_v16 = vld [vmem:[%s2476_s17 + $0x10] sm:$0xff]  ;;  %v393_v18 = vld [vmem:[%s2476_s17 + $0x8] sm:$0xff]  ;;  %s3197_s24 = smov 112  }
  0x3b   : > { %vm414_vm4 = vmpackc.low %vm377_vm2, %vm376_vm0  ;;  %v2484_v17 = vpack.c.bf16 %v394_v16, %v392_v15  ;;  %v395_v19 = vld [vmem:[%s2476_s17 + $0x18] sm:$0xff]  ;;  %v397_v21 = vld [vmem:[%s2476_s17 + $0x28] sm:$0xff]  ;;  %vm3203_vm0 = vcmask 7168   ;;  %vm556_vm2 = vcmask 121856   ;;  %p3229_p9 = scmp.ne.s32.totalorder %s3205_s19, 0  ;;  %s2322_s29 = smov [#allocation7]  }
  0x3c   : > { %v415_v9 = vsel %vm414_vm4, 65537, %v2313_v1  ;;  %vm513_vm5 = vmpackc.low %vm385_vm3, %vm384_vm1  ;;  %v2490_v20 = vpack.c.bf16 %v395_v19, %v393_v18  ;;  %v399_v22 = vld [vmem:[%s2476_s17 + $0x38] sm:$0xff]  ;;  %v396_v29 = vld [vmem:[%s2476_s17 + $0x20] sm:$0xff]  ;;  %s2246_s14 = sshll.u32 %s2322_s29, 4  ;;  %s2247_s14 = int_to_ptr.vmem [resolvable:$false] %s2246_s14 }
  0x3d   : > { %v419_v10 = vrot.slane %v415_v9, %v2459_v7  ;;  %v514_v11 = vsel %vm513_vm5, 65537, %v2313_v1  ;;  %v423_v13 = vrot.slane %v415_v9, %v422_v8  ;;  %v2500_v24 = vpack.c.bf16 %v399_v22, %v397_v21  ;;  %v398_v30 = vld [vmem:[%s2476_s17 + $0x30] sm:$0xff] }
  0x3e   : > { %v518_v12 = vrot.slane %v514_v11, %v2459_v7  ;;  %v522_v14 = vrot.slane %v514_v11, %v422_v8  ;;  %v2523_v33 = vpack.c.bf16 %v398_v30, %v396_v29  ;;  %vm457_vm5 = vcmask 138240  }
  0x3f   : > { %424 = vrot.lane.b32.xlu0 %v419_v10, %s2314_s21 }
  0x40   : > { %523 = vrot.lane.b32.xlu1 %v518_v12, %s3199_s23 }
  0x43   : > { %426 = vrot.lane.b32.xlu0 %v423_v13, %s2314_s21 }
  0x44   : > { %525 = vrot.lane.b32.xlu1 %v522_v14, %s3199_s23 }
  0x47   : > { %575 = vrot.lane.b32.xlu0 %v419_v10, %s3201_s27 }
  0x48   : > { %577 = vrot.lane.b32.xlu1 %v423_v13, %s3201_s27 }
  0x4b   : > { %635 = vrot.lane.b32.xlu0 %v518_v12, %s2317_s22 }
  0x4c   : > { %637 = vrot.lane.b32.xlu1 %v522_v14, %s2317_s22 }
  0x4f   : > { %685 = vrot.lane.b32.xlu0 %v419_v10, %s2318_s25 }
  0x50   : > { %687 = vrot.lane.b32.xlu1 %v423_v13, %s2318_s25 }
  0x53   : > { %2097 = vrot.lane.b32.xlu0 %v2313_v1, %s2319_s26 }
  0x54   : > { %484 = vrot.lane.b32.xlu1 %v2484_v17, %s2320_s28 }
  0x57   : > { %486 = vrot.lane.b32.xlu0 %v2490_v20, %s2320_s28 }
  0x58   : > { %2102 = vrot.lane.b32.xlu1 %v2313_v1, %s2320_s28 }
  0xb1   : > { %v425_v23 = vpop.permute.xlu0 %424 }
  0xb2   : > { %v524_v31 = vpop.permute.xlu1 %523 }
  0xb5   : > { %v2502_v25 = vpop.permute.xlu0 %426 }
  0xb6   : > { %v2506_v26 = vsel %vm428_vm6, %v425_v23, %v2502_v25  ;;  %vm432_vm7 = vcmp.ne.s16.totalorder %v2502_v25, 0  ;;  %v2530_v35 = vpop.permute.xlu1 %525 }
  0xb7   : > { %v438_v27 = vsel %vm432_vm7, %v2500_v24, 0  ;;  %v435_v28 = vsel %vm432_vm7, %v2490_v20, 0  ;;  %vm431_vm8 = vcmp.ne.s16.totalorder %v2506_v26, 0  ;;  %vm531_vm10 = vcmp.ne.s16.totalorder %v2530_v35, 0 }
  0xb8   : > { %455 = vrot.lane.b32.xlu0 %v438_v27, %s2319_s26  ;;  %449 = vrot.lane.b32.xlu1 %v435_v28, %s2319_s26  ;;  %v434_v32 = vsel %vm431_vm8, %v2484_v17, 0  ;;  %v437_v34 = vsel %vm431_vm8, %v2523_v33, 0  ;;  %v2537_v36 = vsel %vm527_vm9, %v524_v31, %v2530_v35  ;;  %v534_v37 = vsel %vm531_vm10, %v2490_v20, 0 }
  0xb9   : > { %vm530_vm11 = vcmp.ne.s16.totalorder %v2537_v36, 0  ;;  %v576_v39 = vpop.permute.xlu0 %575  ;;  %v537_v43 = vsel %vm531_vm10, %v2500_v24, 0 }
  0xba   : > { %v2550_v38 = vpop.permute.xlu1 %577  ;;  %v533_v40 = vsel %vm530_vm11, %v2484_v17, 0  ;;  %v536_v42 = vsel %vm530_vm11, %v2523_v33, 0 }
  0xbb   : > { %v2557_v41 = vsel %vm579_vm12, %v576_v39, %v2550_v38  ;;  %vm583_vm13 = vcmp.ne.s16.totalorder %v2550_v38, 0 }
  0xbc   : > { %774 = vrot.lane.b32.xlu1 %v522_v14, %s2319_s26  ;;  %447 = vrot.lane.b32.xlu0 %v434_v32, %s2319_s26  ;;  %vm582_vm14 = vcmp.ne.s16.totalorder %v2557_v41, 0  ;;  %v586_v45 = vsel %vm583_vm13, %v2490_v20, 0  ;;  %v589_v47 = vsel %vm583_vm13, %v2500_v24, 0 }
  0xbd   : > { %v585_v44 = vsel %vm582_vm14, %v2484_v17, 0  ;;  %v2578_v46 = vpop.permute.xlu0 %635  ;;  %v588_v48 = vsel %vm582_vm14, %v2523_v33, 0 }
  0xbe   : > { %vm3196_vm15 = vcmp.ne.s16.totalorder %v2578_v46, 0  ;;  %v638_v50 = vpop.permute.xlu1 %637 }
  0xbf   : > { %v643_v51 = vsel %vm3196_vm15, %v2484_v17, 0  ;;  %v2599_v52 = vsel %vm3203_vm0, %v2578_v46, %v638_v50  ;;  %v646_v54 = vsel %vm3196_vm15, %v2523_v33, 0 }
  0xc0   : > { %453 = vrot.lane.b32.xlu1 %v437_v34, %s2319_s26  ;;  %772 = vrot.lane.b32.xlu0 %v518_v12, %s2319_s26  ;;  %vm641_vm3 = vcmp.ne.s16.totalorder %v2599_v52, 0  ;;  %v2168_v52 = vld [vmem:[%s3184_s3 + $0x4] ss:$12 sps:$4 sm:$0xff]  }
  0xc1   : > { %v2589_v49 = vpop.permute.xlu0 %685  ;;  %v644_v57 = vsel %vm641_vm3, %v2490_v20, 0  ;;  %v647_v58 = vsel %vm641_vm3, %v2500_v24, 0  ;;  %1583 = vmatprep.mubr.bf16.mxu1 %v2168_v52 }
  0xc2   : > { %vm3194_vm1 = vcmp.ne.s16.totalorder %v2589_v49, 0  ;;  %v688_v53 = vpop.permute.xlu1 %687 }
  0xc3   : > { %v693_v55 = vsel %vm3194_vm1, %v2484_v17, 0  ;;  %v2613_v56 = vsel %vm556_vm2, %v2589_v49, %v688_v53  ;;  %v696_v60 = vsel %vm3194_vm1, %v2523_v33, 0  ;;  %vm494_vm1 = vcmask 130048   ;;  %v862_v53 = vld [vmem:[%s3183_s2 + $0x10] sm:$0xff] }
  0xc4   : > { %490 = vrot.lane.b32.xlu0 %v2523_v33, %s2320_s28  ;;  %492 = vrot.lane.b32.xlu1 %v2500_v24, %s2320_s28  ;;  %vm3195_vm4 = vcmp.ne.s16.totalorder %v2613_v56, 0 }
  0xc5   : > { %v694_v59 = vsel %vm3195_vm4, %v2490_v20, 0  ;;  %v697_v61 = vsel %vm3195_vm4, %v2500_v24, 0  ;;  %v2098_v63 = vpop.permute.xlu0 %2097 }
  0xc6   : > { %v485_v0 = vpop.permute.xlu1 %484  ;;  %v2099_v6 = vunpack.i.l.bf16 %v2098_v63  ;;  %v2100_v12 = vunpack.i.h.bf16 %v2098_v63 }
  0xc8   : > { %548 = vrot.lane.b32.xlu1 %v534_v37, %s2318_s25  ;;  %2107 = vrot.lane.b32.xlu0 %v2313_v1, %s2318_s25 }
  0xc9   : > { %v487_v2 = vpop.permute.xlu0 %486 }
  0xca   : > { %v2103_v3 = vpop.permute.xlu1 %2102  ;;  %v496_v22 = vsel %vm494_vm1, %v485_v0, %v487_v2 }
  0xcb   : > { %v2104_v19 = vunpack.i.l.bf16 %v2103_v3  ;;  %v2105_v34 = vunpack.i.h.bf16 %v2103_v3 }
  0xcc   : > { %2112 = vrot.lane.b32.xlu1 %v2313_v1, %s2317_s22  ;;  %546 = vrot.lane.b32.xlu0 %v533_v40, %s2318_s25 }
  0xcd   : > { %v495_v30 = vsel %vm494_vm1, %v2104_v19, %v485_v0 }
  0xd0   : > { %552 = vrot.lane.b32.xlu1 %v536_v42, %s2318_s25  ;;  %554 = vrot.lane.b32.xlu0 %v537_v43, %s2318_s25  ;;  %v861_v43 = vld [vmem:[%s3183_s2 + $0x8] sm:$0xff] }
  0xd4   : > { %598 = vrot.lane.b32.xlu1 %v585_v44, %s2317_s22  ;;  %600 = vrot.lane.b32.xlu0 %v586_v45, %s2317_s22 }
  0xd8   : > { %606 = vrot.lane.b32.xlu1 %v589_v47, %s2317_s22  ;;  %604 = vrot.lane.b32.xlu0 %v588_v48, %s2317_s22  ;;  %v860_v47 = vld [vmem:[%s3183_s2] sm:$0xff] }
  0xdc   : > { %655 = vrot.lane.b32.xlu0 %v643_v51, %s3201_s27  ;;  %2117 = vrot.lane.b32.xlu1 %v2313_v1, %s3201_s27 }
  0xe0   : > { %661 = vrot.lane.b32.xlu0 %v646_v54, %s3201_s27  ;;  %705 = vrot.lane.b32.xlu1 %v693_v55, %s3199_s23 }
  0xe4   : > { %657 = vrot.lane.b32.xlu0 %v644_v57, %s3201_s27  ;;  %663 = vrot.lane.b32.xlu1 %v647_v58, %s3201_s27  ;;  %v863_v57 = vld [vmem:[%s3183_s2 + $0x18] sm:$0xff]  ;;  %s3215_s27 = smov 113  }
  0xe8   : > { %2122 = vrot.lane.b32.xlu0 %v2313_v1, %s3199_s23  ;;  %707 = vrot.lane.b32.xlu1 %v694_v59, %s3199_s23 }
  0xec   : > { %743 = vrot.lane.b32.xlu0 %v2490_v20, %s3197_s24  ;;  %711 = vrot.lane.b32.xlu1 %v696_v60, %s3199_s23 }
  0xf0   : > { %713 = vrot.lane.b32.xlu0 %v697_v61, %s3199_s23  ;;  %745 = vrot.lane.b32.xlu1 %v2313_v1, %s3197_s24  ;;  %s3212_s23 = smov 127  }
  0xf4   : > { %741 = vrot.lane.b32.xlu0 %v2484_v17, %s3197_s24  ;;  %749 = vrot.lane.b32.xlu1 %v2500_v24, %s3197_s24 }
  0xf8   : > { %751 = vrot.lane.b32.xlu0 %v2313_v1, %s3197_s24  ;;  %747 = vrot.lane.b32.xlu1 %v2523_v33, %s3197_s24 }
  0xfc   : > { %796 = vrot.lane.b32.xlu1 %v2313_v1, %s2314_s21 }
 0x12a   : > { %v456_v4 = vpop.permute.xlu0 %455  ;;  %v450_v5 = vpop.permute.xlu1 %449 }
 0x12e   : > { %v775_v8 = vpop.permute.xlu1 %774  ;;  %v448_v9 = vpop.permute.xlu0 %447 }
 0x12f   : > { %v459_v10 = vsel %vm457_vm5, %v448_v9, %v450_v5  ;;  %v458_v11 = vsel %vm457_vm5, %v2099_v6, %v448_v9 }
 0x130   : > { %921 = vmatprep.subr.bf16.mxu0 %v459_v10 }
 0x131   : > { %922 = vmatpush1.bf16.msra.mxu0 %v458_v11 }
 0x132   : > { %v454_v13 = vpop.permute.xlu1 %453  ;;  %v2656_v14 = vpop.permute.xlu0 %772 }
 0x133   : > { %v2660_v15 = vsel %vm457_vm5, %v2656_v14, %v775_v8  ;;  %vm777_vm4 = vcmp.ne.s16.totalorder %v2656_v14, 0  ;;  %v461_v16 = vsel %vm457_vm5, %v454_v13, %v456_v4  ;;  %v460_v18 = vsel %vm457_vm5, %v2100_v12, %v454_v13  ;;  %v1493_v14 = vld [vmem:[%s3185_s4 + $0x10] sm:$0xff] }
 0x134   : > { %vm778_vm15 = vcmp.ne.s16.totalorder %v2660_v15, 0  ;;  %923 = vmatprep.subr.bf16.mxu0 %v461_v16  ;;  %v780_v21 = vsel %vm777_vm4, %v2484_v17, 0  ;;  %v783_v32 = vsel %vm777_vm4, %v2523_v33, 0  ;;  %v1492_v15 = vld [vmem:[%s3185_s4 + $0x8] sm:$0xff] }
 0x135   : > { %924 = vmatpush1.bf16.msra.mxu0 %v460_v18  ;;  %792 = vrot.lane.b32.xlu0 %v780_v21, %s2314_s21  ;;  %v784_v23 = vsel %vm778_vm15, %v2500_v24, 0  ;;  %v781_v31 = vsel %vm778_vm15, %v2490_v20, 0 }
 0x136   : > { %925 = vmatprep.subr.bf16.mxu0 %v496_v22  ;;  %800 = vrot.lane.b32.xlu1 %v784_v23, %s2314_s21  ;;  %v491_v27 = vpop.permute.xlu0 %490  ;;  %v493_v28 = vpop.permute.xlu1 %492 }
 0x137   : > { %v498_v29 = vsel %vm494_vm1, %v491_v27, %v493_v28  ;;  %v497_v42 = vsel %vm494_vm1, %v2105_v34, %v491_v27 }
 0x139   : > { %926 = vmatpush1.bf16.msra.mxu0 %v495_v30  ;;  %794 = vrot.lane.b32.xlu0 %v781_v31, %s2314_s21 }
 0x13a   : > { %798 = vrot.lane.b32.xlu1 %v783_v32, %s2314_s21  ;;  %927 = vmatprep.subr.bf16.mxu0 %v498_v29  ;;  %v549_v37 = vpop.permute.xlu1 %548  ;;  %v2108_v39 = vpop.permute.xlu0 %2107 }
 0x13b   : > { %v2109_v40 = vunpack.i.l.bf16 %v2108_v39  ;;  %v2110_v48 = vunpack.i.h.bf16 %v2108_v39 }
 0x13d   : > { %802 = vrot.lane.b32.xlu0 %v2313_v1, %s2314_s21  ;;  %928 = vmatpush1.bf16.msra.mxu0 %v497_v42 }
 0x13e   : > { %v2113_v44 = vpop.permute.xlu1 %2112  ;;  %v547_v45 = vpop.permute.xlu0 %546  ;;  %871 = vperm.xlu1 %2127, %v861_v43  }
 0x13f   : > { %v558_v50 = vsel %vm556_vm2, %v547_v45, %v549_v37  ;;  %v557_v51 = vsel %vm556_vm2, %v2109_v40, %v547_v45  ;;  %v2114_v58 = vunpack.i.l.bf16 %v2113_v44  ;;  %v2115_v63 = vunpack.i.h.bf16 %v2113_v44 }
 0x140   : > { %929 = vmatprep.subr.bf16.mxu0 %v558_v50  ;;  %v2158_v50 = vld [vmem:[#allocation4] ss:$12 sps:$4 sm:$0xff]  }
 0x141   : > { %930 = vmatpush1.bf16.msra.mxu0 %v557_v51  ;;  %866 = vperm.xlu0 %2126, %v860_v47   ;;  %v2161_v51 = vld [vmem:[#allocation4 + $0x1c] ss:$12 sps:$4 sm:$0xff]  }
 0x142   : > { %v553_v54 = vpop.permute.xlu1 %552  ;;  %v555_v55 = vpop.permute.xlu0 %554  ;;  %876 = vperm.xlu1 %2127, %v862_v53   ;;  %v2163_v53 = vld [vmem:[#allocation4 + $0x18] ss:$12 sps:$4 sm:$0xff]  }
 0x143   : > { %v560_v59 = vsel %vm556_vm2, %v553_v54, %v555_v55  ;;  %v559_v60 = vsel %vm556_vm2, %v2110_v48, %v553_v54 }
 0x144   : > { %931 = vmatprep.subr.bf16.mxu0 %v560_v59 }
 0x145   : > { %932 = vmatpush1.bf16.msra.mxu0 %v559_v60  ;;  %881 = vperm.xlu0 %2126, %v863_v57  }
 0x146   : > { %v599_v61 = vpop.permute.xlu1 %598  ;;  %v601_v62 = vpop.permute.xlu0 %600 }
 0x147   : > { %v610_v0 = vsel %vm3203_vm0, %v599_v61, %v601_v62  ;;  %v609_v2 = vsel %vm3203_vm0, %v2114_v58, %v599_v61 }
 0x148   : > { %933 = vmatprep.subr.bf16.mxu0 %v610_v0 }
 0x149   : > { %934 = vmatpush1.bf16.msra.mxu0 %v609_v2  ;;  %v2164_v2 = vld [vmem:[#allocation4 + $0x8] ss:$12 sps:$4 sm:$0xff]  }
 0x14a   : > { %v607_v3 = vpop.permute.xlu1 %606  ;;  %v605_v4 = vpop.permute.xlu0 %604 }
 0x14b   : > { %v612_v5 = vsel %vm3203_vm0, %v605_v4, %v607_v3  ;;  %v611_v6 = vsel %vm3203_vm0, %v2115_v63, %v605_v4  ;;  %vm3204_vm0 = vcmask 916480   ;;  %v2165_v3 = vld [vmem:[#allocation4 + $0x20] ss:$12 sps:$4 sm:$0xff]  }
 0x14c   : > { %935 = vmatprep.subr.bf16.mxu0 %v612_v5 }
 0x14d   : > { %936 = vmatpush1.bf16.msra.mxu0 %v611_v6 }
 0x14e   : > { %v656_v8 = vpop.permute.xlu0 %655  ;;  %937 = vmatprep.subr.bf16.mxu0 %v2490_v20  ;;  %v2118_v9 = vpop.permute.xlu1 %2117 }
 0x14f   : > { %v2120_v12 = vunpack.i.h.bf16 %v2118_v9  ;;  %v2119_v13 = vunpack.i.l.bf16 %v2118_v9 }
 0x151   : > { %938 = vmatpush1.bf16.msra.mxu0 %v2484_v17 }
 0x152   : > { %v662_v10 = vpop.permute.xlu0 %661  ;;  %939 = vmatprep.subr.bf16.mxu0 %v2500_v24  ;;  %v706_v11 = vpop.permute.xlu1 %705 }
 0x155   : > { %940 = vmatpush1.bf16.msra.mxu0 %v2523_v33 }
 0x156   : > { %v658_v16 = vpop.permute.xlu0 %657  ;;  %v664_v18 = vpop.permute.xlu1 %663 }
 0x157   : > { %v668_v19 = vsel %vm579_vm12, %v658_v16, %v2119_v13  ;;  %v667_v21 = vsel %vm579_vm12, %v656_v8, %v658_v16  ;;  %v670_v22 = vsel %vm579_vm12, %v664_v18, %v2120_v12  ;;  %v669_v17 = vsel %vm579_vm12, %v662_v10, %v664_v18 }
 0x158   : > { %941 = vmatprep.subr.bf16.mxu0 %v668_v19 }
 0x159   : > { %942 = vmatpush1.bf16.msra.mxu0 %v667_v21 }
 0x15a   : > { %v2123_v20 = vpop.permute.xlu0 %2122  ;;  %943 = vmatprep.subr.bf16.mxu0 %v670_v22  ;;  %v708_v24 = vpop.permute.xlu1 %707 }
 0x15b   : > { %v2124_v23 = vunpack.i.l.bf16 %v2123_v20  ;;  %v717_v28 = vsel %vm527_vm9, %v706_v11, %v708_v24  ;;  %v2125_v30 = vunpack.i.h.bf16 %v2123_v20 }
 0x15d   : > { %944 = vmatpush1.bf16.msra.mxu0 %v669_v17  ;;  %v718_v27 = vsel %vm527_vm9, %v708_v24, %v2124_v23 }
 0x15e   : > { %v744_v33 = vpop.permute.xlu0 %743  ;;  %945 = vmatprep.subr.bf16.mxu0 %v718_v27  ;;  %v712_v29 = vpop.permute.xlu1 %711 }
 0x161   : > { %946 = vmatpush1.bf16.msra.mxu0 %v717_v28 }
 0x162   : > { %v714_v31 = vpop.permute.xlu0 %713  ;;  %v746_v32 = vpop.permute.xlu1 %745 }
 0x163   : > { %v720_v34 = vsel %vm527_vm9, %v714_v31, %v2125_v30  ;;  %v719_v37 = vsel %vm527_vm9, %v712_v29, %v714_v31  ;;  %v755_v39 = vsel %vm3204_vm0, %v744_v33, %v746_v32 }
 0x164   : > { %947 = vmatprep.subr.bf16.mxu0 %v720_v34 }
 0x165   : > { %948 = vmatpush1.bf16.msra.mxu0 %v719_v37 }
 0x166   : > { %v742_v40 = vpop.permute.xlu0 %741  ;;  %949 = vmatprep.subr.bf16.mxu0 %v755_v39  ;;  %v750_v42 = vpop.permute.xlu1 %749 }
 0x167   : > { %v754_v43 = vsel %vm3204_vm0, %v742_v40, %v744_v33 }
 0x169   : > { %950 = vmatpush1.bf16.msra.mxu0 %v754_v43 }
 0x16a   : > { %v752_v44 = vpop.permute.xlu0 %751  ;;  %v748_v45 = vpop.permute.xlu1 %747 }
 0x16b   : > { %v757_v47 = vsel %vm3204_vm0, %v750_v42, %v752_v44  ;;  %v756_v48 = vsel %vm3204_vm0, %v748_v45, %v750_v42  ;;  %vm914_vm0 = vcmask 261120  }
 0x16c   : > { %951 = vmatprep.subr.bf16.mxu0 %v757_v47 }
 0x16d   : > { %952 = vmatpush1.bf16.msra.mxu0 %v756_v48 }
 0x16e   : > { %v797_v54 = vpop.permute.xlu1 %796 }
 0x170   : > { %954 = vmatmul.mubr.bf16.vlgmr.msra.gmra.mrb[0].mxu0 %v2158_v50 }
 0x171   : > { %963 = vmatprep.mubr.bf16.mxu0 %v2161_v51 }
 0x178   : > { %964 = vmatmul.mubr.bf16.gmra.mrb[4].mxu0 %v2163_v53 }
 0x179   : > { %1006 = vmatprep.mubr.bf16.mxu0 %v2313_v1 }
 0x1a7   : > { %v793_v55 = vpop.permute.xlu0 %792 }
 0x1a8   : > { %v801_v57 = vpop.permute.xlu1 %800 }
 0x1ab   : > { %v795_v58 = vpop.permute.xlu0 %794 }
 0x1ac   : > { %v804_v59 = vsel %vm428_vm6, %v793_v55, %v795_v58  ;;  %v805_v60 = vsel %vm428_vm6, %v795_v58, %v797_v54  ;;  %v799_v61 = vpop.permute.xlu1 %798 }
 0x1ad   : > { %974 = vmatprep.subr.bf16.mxu0 %v805_v60  ;;  %v806_v0 = vsel %vm428_vm6, %v799_v61, %v801_v57 }
 0x1ae   : > { %975 = vmatpush1.bf16.msra.mxu0 %v804_v59 }
 0x1af   : > { %v803_v62 = vpop.permute.xlu0 %802 }
 0x1b0   : > { %v807_v63 = vsel %vm428_vm6, %v801_v57, %v803_v62 }
 0x1b1   : > { %976 = vmatprep.subr.bf16.mxu0 %v807_v63 }
 0x1b2   : > { %977 = vmatpush1.bf16.msra.mxu0 %v806_v0 }
 0x1b5   : > { %1981 = vmatmul.mubr.msk.bf16.vlgmr.msra.gmra.mrb[0].mxu0 %vm914_vm0, %v2164_v2 }
 0x1b6   : > { %1016 = vmatprep.mubr.bf16.mxu0 %v2313_v1 }
 0x1bd   : > { %1982 = vmatmul.mubr.msk.bf16.gmra.mrb[4].mxu0 %vm914_vm0, %v2165_v3  ;;  %v872_v10 = vpop.permute.xlu1 %871 }
 0x1c0   : > { %v867_v4 = vpop.permute.xlu0 %866 }
 0x1c1   : > { %v877_v24 = vpop.permute.xlu1 %876 }
 0x1c4   : > { %v882_v29 = vpop.permute.xlu0 %881 }
 0x288   : > { %v1008_v5 = vpop.f32.mrb[0].mxu0 }
 0x289   : > { %v2732_v6 = vadd.f32 %v1008_v5, %v867_v4  ;;  %v1010_v8 = vpop.f32.mrb[1].mxu0 }
 0x28a   : > { %v2734_v9 = vadd.f32 %v1010_v8, %v867_v4  ;;  %v1012_v11 = vpop.f32.mrb[2].mxu0 }
 0x28b   : > { %v2736_v12 = vadd.f32 %v1012_v11, %v872_v10  ;;  %v1014_v13 = vpop.f32.mrb[3].mxu0  ;;  %v1043_v20 = vmul.f32 %v2732_v6, %v2732_v6 }
 0x28c   : > { %v2738_v16 = vadd.f32 %v1014_v13, %v872_v10  ;;  %v1027_v18 = vadd.f32 %v2734_v9, %v2732_v6  ;;  %v1044_v17 = vmul.f32 %v2734_v9, %v2734_v9 }
 0x28d   : > { %v1045_v19 = vmul.f32 %v2736_v12, %v2736_v12 }
 0x28e   : > { %1028 = vadd.xlane.f32.xlu1 %v1027_v18  ;;  %v1030_v21 = vadd.f32 %v2738_v16, %v2736_v12  ;;  %v1046_v22 = vmul.f32 %v2738_v16, %v2738_v16  ;;  %v1051_v32 = vadd.f32 %v1044_v17, %v1043_v20 }
 0x290   : > { %v1018_v23 = vpop.f32.mrb[4].mxu0  ;;  %1031 = vadd.xlane.f32.xlu0 %v1030_v21  ;;  %v1054_v27 = vadd.f32 %v1046_v22, %v1045_v19 }
 0x291   : > { %v2752_v33 = vadd.f32 %v1018_v23, %v877_v24  ;;  %v1020_v28 = vpop.f32.mrb[5].mxu0 }
 0x292   : > { %v2754_v30 = vadd.f32 %v1020_v28, %v877_v24  ;;  %v1022_v31 = vpop.f32.mrb[6].mxu0  ;;  %1055 = vadd.xlane.f32.xlu1 %v1054_v27 }
 0x293   : > { %v2756_v34 = vadd.f32 %v1022_v31, %v882_v29  ;;  %v1024_v37 = vpop.f32.mrb[7].mxu0  ;;  %v1047_v42 = vmul.f32 %v2752_v33, %v2752_v33 }
 0x294   : > { %v2758_v39 = vadd.f32 %v1024_v37, %v882_v29  ;;  %1052 = vadd.xlane.f32.xlu0 %v1051_v32  ;;  %v1033_v40 = vadd.f32 %v2754_v30, %v2752_v33  ;;  %v1048_v44 = vmul.f32 %v2754_v30, %v2754_v30 }
 0x295   : > { %v1049_v45 = vmul.f32 %v2756_v34, %v2756_v34 }
 0x296   : > { %v1036_v43 = vadd.f32 %v2758_v39, %v2756_v34  ;;  %v1050_v47 = vmul.f32 %v2758_v39, %v2758_v39  ;;  %v1057_v48 = vadd.f32 %v1048_v44, %v1047_v42 }
 0x298   : > { %1034 = vadd.xlane.f32.xlu0 %v1033_v40  ;;  %1037 = vadd.xlane.f32.xlu1 %v1036_v43  ;;  %v1060_v50 = vadd.f32 %v1050_v47, %v1049_v45 }
 0x29c   : > { %1058 = vadd.xlane.f32.xlu0 %v1057_v48  ;;  %1061 = vadd.xlane.f32.xlu1 %v1060_v50 }
 0x2ad   : > { %2129 = vrot.lane.b32.xlu1 %v2313_v1, %s2319_s26 }
 0x2b2   : > { %2134 = vrot.lane.b32.xlu0 %v2313_v1, %s2320_s28 }
 0x31b   : > { %v1029_v51 = vpop.xlane.xlu1 %1028 }
 0x31c   : > { %v1039_v54 = vmul.f32 0.00390625, %v1029_v51 }
 0x31d   : > { %v1032_v53 = vpop.xlane.xlu0 %1031 }
 0x31e   : > { %v1040_v55 = vmul.f32 0.00390625, %v1032_v53  ;;  %v1067_v63 = vmul.f32 %v1039_v54, %v1039_v54  ;;  %v1075_v31 = vsub.f32 %v2732_v6, %v1039_v54  ;;  %v1076_v32 = vsub.f32 %v2734_v9, %v1039_v54 }
 0x31f   : > { %v1056_v57 = vpop.xlane.xlu1 %1055 }
 0x320   : > { %v1068_v58 = vmul.f32 %v1040_v55, %v1040_v55  ;;  %v1064_v59 = vmul.f32 0.00390625, %v1056_v57  ;;  %v1077_v27 = vsub.f32 %v2736_v12, %v1040_v55  ;;  %v1078_v28 = vsub.f32 %v2738_v16, %v1040_v55 }
 0x321   : > { %v1053_v60 = vpop.xlane.xlu0 %1052 }
 0x322   : > { %v1072_v61 = vsub.f32 %v1064_v59, %v1068_v58  ;;  %v1063_v62 = vmul.f32 0.00390625, %v1053_v60 }
 0x324   : > { %v1084_v0 = vadd.f32 1e-05, %v1072_v61  ;;  %v1071_v2 = vsub.f32 %v1063_v62, %v1067_v63 }
 0x325   : > { %v1035_v3 = vpop.xlane.xlu0 %1034  ;;  %v1038_v4 = vpop.xlane.xlu1 %1037 }
 0x326   : > { %2174 = vrsqrt.f32 %v1084_v0  ;;  %v1083_v5 = vadd.f32 1e-05, %v1071_v2  ;;  %v1041_v8 = vmul.f32 0.00390625, %v1035_v3  ;;  %v1042_v10 = vmul.f32 0.00390625, %v1038_v4 }
 0x328   : > { %2176 = vrsqrt.f32 %v1083_v5  ;;  %v1069_v18 = vmul.f32 %v1041_v8, %v1041_v8  ;;  %v1070_v21 = vmul.f32 %v1042_v10, %v1042_v10  ;;  %v1079_v16 = vsub.f32 %v2752_v33, %v1041_v8 }
 0x329   : > { %v1059_v11 = vpop.xlane.xlu0 %1058  ;;  %v1062_v13 = vpop.xlane.xlu1 %1061  ;;  %v1080_v6 = vsub.f32 %v2754_v30, %v1041_v8  ;;  %v1081_v53 = vsub.f32 %v2756_v34, %v1042_v10  ;;  %v1082_v54 = vsub.f32 %v2758_v39, %v1042_v10 }
 0x32a   : > { %v1065_v19 = vmul.f32 0.00390625, %v1059_v11  ;;  %v1066_v22 = vmul.f32 0.00390625, %v1062_v13 }
 0x32c   : > { %v1073_v20 = vsub.f32 %v1065_v19, %v1069_v18  ;;  %v1074_v17 = vsub.f32 %v1066_v22, %v1070_v21 }
 0x32e   : > { %v1085_v24 = vadd.f32 1e-05, %v1073_v20  ;;  %v1086_v23 = vadd.f32 1e-05, %v1074_v17  ;;  %v1491_v17 = vld [vmem:[%s3185_s4] sm:$0xff] }
 0x330   : > { %v2175_v29 = vpop.eup %2174  ;;  %2178 = vrsqrt.f32 %v1085_v24  ;;  %v1494_v24 = vld [vmem:[%s3185_s4 + $0x18] sm:$0xff] }
 0x331   : > { %v1093_v37 = vmul.f32 %v2175_v29, %v1077_v27  ;;  %v1094_v40 = vmul.f32 %v2175_v29, %v1078_v28  ;;  %2180 = vrsqrt.f32 %v1086_v23  ;;  %v2135_v23 = vpop.permute.xlu0 %2134  ;;  %v2130_v27 = vpop.permute.xlu1 %2129 }
 0x332   : > { %v2177_v42 = vpop.eup %2176 }
 0x333   : > { %v1091_v43 = vmul.f32 %v2177_v42, %v1075_v31  ;;  %v1092_v44 = vmul.f32 %v2177_v42, %v1076_v32  ;;  %v1101_v45 = vmax.f32 %v1093_v37, 0.0  ;;  %v1102_v47 = vmax.f32 %v1094_v40, 0.0 }
 0x334   : > { %v2131_v31 = vunpack.i.l.bf16 %v2130_v27 }
 0x335   : > { %v1099_v48 = vmax.f32 %v1091_v43, 0.0  ;;  %v1100_v50 = vmax.f32 %v1092_v44, 0.0  ;;  %v2132_v43 = vunpack.i.h.bf16 %v2130_v27 }
 0x337   : > { %v2780_v51 = vpack.c.bf16 %v1101_v45, %v1099_v48  ;;  %v2782_v12 = vpack.c.bf16 %v1102_v47, %v1100_v50  ;;  %v2136_v50 = vunpack.i.l.bf16 %v2135_v23 }
 0x339   : > { %1173 = vrot.lane.b32.xlu1 %v2782_v12, %s2320_s28  ;;  %1171 = vrot.lane.b32.xlu0 %v2780_v51, %s2320_s28  ;;  %v1123_v33 = vsel %vm432_vm7, %v2782_v12, 0  ;;  %v1122_v30 = vsel %vm431_vm8, %v2780_v51, 0  ;;  %v1200_v4 = vsel %vm530_vm11, %v2780_v51, 0  ;;  %v1201_v25 = vsel %vm531_vm10, %v2782_v12, 0 }
 0x33a   : > { %v2179_v9 = vpop.eup %2178  ;;  %v1242_v26 = vsel %vm582_vm14, %v2780_v51, 0  ;;  %v1243_v10 = vsel %vm583_vm13, %v2782_v12, 0  ;;  %v1292_v11 = vsel %vm641_vm3, %v2782_v12, 0 }
 0x33b   : > { %v2181_v55 = vpop.eup %2180  ;;  %v1095_v57 = vmul.f32 %v2179_v9, %v1079_v16  ;;  %v1096_v58 = vmul.f32 %v2179_v9, %v1080_v6 }
 0x33c   : > { %v1097_v59 = vmul.f32 %v2181_v55, %v1081_v53  ;;  %v1098_v60 = vmul.f32 %v2181_v55, %v1082_v54  ;;  %v2137_v55 = vunpack.i.h.bf16 %v2135_v23 }
 0x33d   : > { %v1103_v61 = vmax.f32 %v1095_v57, 0.0  ;;  %v1104_v62 = vmax.f32 %v1096_v58, 0.0  ;;  %1137 = vrot.lane.b32.xlu1 %v1123_v33, %s2319_s26  ;;  %1135 = vrot.lane.b32.xlu0 %v1122_v30, %s2319_s26 }
 0x33e   : > { %v1105_v34 = vmax.f32 %v1097_v59, 0.0  ;;  %v1106_v39 = vmax.f32 %v1098_v60, 0.0 }
 0x340   : > { %v2800_v63 = vpack.c.bf16 %v1105_v34, %v1103_v61  ;;  %v2802_v0 = vpack.c.bf16 %v1106_v39, %v1104_v62 }
 0x342   : > { %v1126_v2 = vsel %vm432_vm7, %v2802_v0, 0  ;;  %v1125_v3 = vsel %vm431_vm8, %v2800_v63, 0  ;;  %v1204_v5 = vsel %vm531_vm10, %v2802_v0, 0  ;;  %v1203_v8 = vsel %vm530_vm11, %v2800_v63, 0 }
 0x343   : > { %1143 = vrot.lane.b32.xlu1 %v1126_v2, %s2319_s26  ;;  %1141 = vrot.lane.b32.xlu0 %v1125_v3, %s2319_s26  ;;  %v1245_v35 = vsel %vm582_vm14, %v2800_v63, 0  ;;  %v1246_v36 = vsel %vm583_vm13, %v2802_v0, 0  ;;  %vm3213_vm7 = vcmp.ne.s16.totalorder %v2578_v46, 0  ;;  %vm3214_vm8 = vcmp.ne.s16.totalorder %v2613_v56, 0 }
 0x344   : > { %v1291_v41 = vsel %vm3213_vm7, %v2780_v51, 0  ;;  %v1334_v38 = vsel %vm3214_vm8, %v2782_v12, 0  ;;  %v1295_v13 = vsel %vm641_vm3, %v2802_v0, 0  ;;  %vm3216_vm10 = vmmov %vm3213_vm7  ;;  %vm3217_vm11 = vcmp.ne.s16.totalorder %v2589_v49, 0 }
 0x345   : > { %v1294_v18 = vsel %vm3216_vm10, %v2800_v63, 0  ;;  %v1333_v19 = vsel %vm3217_vm11, %v2780_v51, 0  ;;  %vm3219_vm13 = vmmov %vm3214_vm8  ;;  %v1412_v49 = vsel %vm778_vm15, %v2782_v12, 0  ;;  %v1411_v56 = vsel %vm777_vm4, %v2780_v51, 0 }
 0x346   : > { %v1337_v46 = vsel %vm3219_vm13, %v2802_v0, 0  ;;  %vm3220_vm14 = vmmov %vm3217_vm11  ;;  %v1415_v22 = vsel %vm778_vm15, %v2802_v0, 0  ;;  %v1414_v20 = vsel %vm777_vm4, %v2800_v63, 0  ;;  %vm3221_vm15 = vcmask 7168  }
 0x347   : > { %1177 = vrot.lane.b32.xlu1 %v2800_v63, %s2320_s28  ;;  %1179 = vrot.lane.b32.xlu0 %v2802_v0, %s2320_s28  ;;  %v1336_v21 = vsel %vm3220_vm14, %v2800_v63, 0 }
 0x34b   : > { %1213 = vrot.lane.b32.xlu1 %v1200_v4, %s2318_s25  ;;  %1215 = vrot.lane.b32.xlu0 %v1201_v25, %s2318_s25 }
 0x34f   : > { %2139 = vrot.lane.b32.xlu1 %v2313_v1, %s2318_s25  ;;  %1255 = vrot.lane.b32.xlu0 %v1242_v26, %s2317_s22 }
 0x353   : > { %1221 = vrot.lane.b32.xlu1 %v1204_v5, %s2318_s25  ;;  %1219 = vrot.lane.b32.xlu0 %v1203_v8, %s2318_s25  ;;  %s2001_s25 = sshll.u32 %s2395_s13, 10 }
 0x354   : > { %s3133_s16 = scalar_lea.hbm %s3190_s9, %s2001_s25 }
 0x357   : > { %1257 = vrot.lane.b32.xlu1 %v1243_v10, %s2317_s22  ;;  %2144 = vrot.lane.b32.xlu0 %v2313_v1, %s2317_s22 }
 0x35b   : > { %1261 = vrot.lane.b32.xlu1 %v1245_v35, %s2317_s22  ;;  %1263 = vrot.lane.b32.xlu0 %v1246_v36, %s2317_s22  ;;  %s3218_s22 = smov 112  }
 0x35f   : > { %1305 = vrot.lane.b32.xlu1 %v1292_v11, %s3212_s23  ;;  %2149 = vrot.lane.b32.xlu0 %v2313_v1, %s3212_s23 }
 0x363   : > { %1303 = vrot.lane.b32.xlu1 %v1291_v41, %s3212_s23  ;;  %1347 = vrot.lane.b32.xlu0 %v1334_v38, %s3215_s27 }
 0x367   : > { %2154 = vrot.lane.b32.xlu1 %v2313_v1, %s3215_s27  ;;  %1311 = vrot.lane.b32.xlu0 %v1295_v13, %s3212_s23 }
 0x36b   : > { %1309 = vrot.lane.b32.xlu1 %v1294_v18, %s3212_s23  ;;  %1345 = vrot.lane.b32.xlu0 %v1333_v19, %s3215_s27  ;;  %s338_s23 = sand.u32 1, %s2300_s10  }
 0x36c   : > { %s3139_s13 = scalar_lea.sflag [#allocation6], %s338_s23 }
 0x36f   : > { %1383 = vrot.lane.b32.xlu1 %v2782_v12, %s3218_s22  ;;  %1385 = vrot.lane.b32.xlu0 %v2313_v1, %s3218_s22 }
 0x373   : > { %1353 = vrot.lane.b32.xlu1 %v1337_v46, %s3215_s27  ;;  %1351 = vrot.lane.b32.xlu0 %v1336_v21, %s3215_s27  ;;  %s1972_s27 = sshll.u32 %s338_s23, 6 }
 0x377   : > { %1381 = vrot.lane.b32.xlu1 %v2780_v51, %s3218_s22  ;;  %1389 = vrot.lane.b32.xlu0 %v2802_v0, %s3218_s22 }
 0x37b   : > { %1391 = vrot.lane.b32.xlu1 %v2313_v1, %s3218_s22  ;;  %1387 = vrot.lane.b32.xlu0 %v2800_v63, %s3218_s22  ;;  %s340_s22 = scalar_lea.vmem [#allocation7], %s1972_s27  ;;  %s2248_s27 = scalar_lea.vmem %s2247_s14, 2048 }
 0x37f   : > { %1425 = vrot.lane.b32.xlu1 %v1412_v49, %s2314_s21  ;;  %1427 = vrot.lane.b32.xlu0 %v2313_v1, %s2314_s21 }
 0x383   : > { %1423 = vrot.lane.b32.xlu1 %v1411_v56, %s2314_s21  ;;  %1431 = vrot.lane.b32.xlu0 %v1415_v22, %s2314_s21 }
 0x387   : > { %1433 = vrot.lane.b32.xlu1 %v2313_v1, %s2314_s21  ;;  %1429 = vrot.lane.b32.xlu0 %v1414_v20, %s2314_s21  ;;  %s1892_s21 = sshll.u32 %s340_s22, 4  ;;  %s3135_s21 = int_to_ptr.vmem [resolvable:$true] %s1892_s21 }
 0x388   : > { %p2249_p2 = scmp.lt.s32.totalorder %s3135_s21, %s2247_s14 }
 0x38b   : > { %1497 = vperm.xlu1 %2127, %v1491_v17   ;;  %1502 = vperm.xlu0 %2126, %v1492_v15  }
 0x38f   : > { %1507 = vperm.xlu1 %2127, %v1493_v14   ;;  %1512 = vperm.xlu0 %2126, %v1494_v24  }
 0x3ab   : > { %v1172_v28 = vpop.permute.xlu0 %1171  ;;  %v1174_v29 = vpop.permute.xlu1 %1173 }
 0x3ac   : > { %v1182_v16 = vsel %vm494_vm1, %v1172_v28, %v1174_v29  ;;  %v1181_v53 = vsel %vm494_vm1, %v2136_v50, %v1172_v28  ;;  %v2166_v50 = vld [vmem:[%s3184_s3] ss:$12 sps:$4 sm:$0xff]  }
 0x3af   : > { %v1136_v32 = vpop.permute.xlu0 %1135  ;;  %v1138_v37 = vpop.permute.xlu1 %1137 }
 0x3b0   : > { %v1146_v40 = vsel %vm457_vm5, %v1136_v32, %v1138_v37  ;;  %v1145_v42 = vsel %vm457_vm5, %v2131_v31, %v1136_v32 }
 0x3b1   : > { %1551 = vmatprep.subr.bf16.mxu1 %v1146_v40 }
 0x3b2   : > { %1552 = vmatpush1.bf16.msra.mxu1 %v1145_v42 }
 0x3b5   : > { %v1142_v44 = vpop.permute.xlu0 %1141  ;;  %v1144_v45 = vpop.permute.xlu1 %1143 }
 0x3b6   : > { %v1148_v47 = vsel %vm457_vm5, %v1142_v44, %v1144_v45  ;;  %v1147_v48 = vsel %vm457_vm5, %v2132_v43, %v1142_v44 }
 0x3b7   : > { %1553 = vmatprep.subr.bf16.mxu1 %v1148_v47 }
 0x3b8   : > { %1554 = vmatpush1.bf16.msra.mxu1 %v1147_v48 }
 0x3b9   : > { %v1180_v6 = vpop.permute.xlu0 %1179  ;;  %v1178_v9 = vpop.permute.xlu1 %1177  ;;  %1555 = vmatprep.subr.bf16.mxu1 %v1182_v16 }
 0x3ba   : > { %v1184_v54 = vsel %vm494_vm1, %v1178_v9, %v1180_v6  ;;  %v1183_v59 = vsel %vm494_vm1, %v2137_v55, %v1178_v9  ;;  %vm3222_vm1 = vmmov %vm3221_vm15  ;;  %v2169_v9 = vld [vmem:[%s3184_s3 + $0x1c] ss:$12 sps:$4 sm:$0xff]  }
 0x3bb   : > { %vm3223_vm3 = vmmov %vm3222_vm1 }
 0x3bc   : > { %1556 = vmatpush1.bf16.msra.mxu1 %v1181_v53  ;;  %vm3224_vm4 = vmmov %vm3222_vm1 }
 0x3bd   : > { %v1216_v57 = vpop.permute.xlu0 %1215  ;;  %v1214_v58 = vpop.permute.xlu1 %1213  ;;  %1557 = vmatprep.subr.bf16.mxu1 %v1184_v54 }
 0x3be   : > { %v1224_v60 = vsel %vm556_vm2, %v1214_v58, %v1216_v57 }
 0x3c0   : > { %1558 = vmatpush1.bf16.msra.mxu1 %v1183_v59 }
 0x3c1   : > { %v1256_v33 = vpop.permute.xlu0 %1255  ;;  %v2140_v30 = vpop.permute.xlu1 %2139  ;;  %1559 = vmatprep.subr.bf16.mxu1 %v1224_v60 }
 0x3c2   : > { %v2141_v61 = vunpack.i.l.bf16 %v2140_v30  ;;  %v2142_v2 = vunpack.i.h.bf16 %v2140_v30 }
 0x3c4   : > { %v1223_v62 = vsel %vm556_vm2, %v2141_v61, %v1214_v58  ;;  %v2171_v58 = vld [vmem:[%s3184_s3 + $0x18] ss:$12 sps:$4 sm:$0xff]   ;;  %v2172_v61 = vld [vmem:[%s3184_s3 + $0x8] ss:$12 sps:$4 sm:$0xff]  }
 0x3c5   : > { %v1220_v34 = vpop.permute.xlu0 %1219  ;;  %v1222_v39 = vpop.permute.xlu1 %1221  ;;  %1560 = vmatpush1.bf16.msra.mxu1 %v1223_v62  ;;  %v2173_v62 = vld [vmem:[%s3184_s3 + $0x20] ss:$12 sps:$4 sm:$0xff]  }
 0x3c6   : > { %v1226_v3 = vsel %vm556_vm2, %v1220_v34, %v1222_v39  ;;  %v1225_v4 = vsel %vm556_vm2, %v2142_v2, %v1220_v34 }
 0x3c7   : > { %1561 = vmatprep.subr.bf16.mxu1 %v1226_v3 }
 0x3c9   : > { %v2145_v25 = vpop.permute.xlu0 %2144  ;;  %v1258_v26 = vpop.permute.xlu1 %1257  ;;  %1562 = vmatpush1.bf16.msra.mxu1 %v1225_v4 }
 0x3ca   : > { %v2146_v5 = vunpack.i.l.bf16 %v2145_v25  ;;  %v1266_v8 = vsel %vm3221_vm15, %v1256_v33, %v1258_v26  ;;  %v2147_v11 = vunpack.i.h.bf16 %v2145_v25 }
 0x3cb   : > { %1563 = vmatprep.subr.bf16.mxu1 %v1266_v8 }
 0x3cc   : > { %v1265_v10 = vsel %vm3222_vm1, %v2146_v5, %v1256_v33 }
 0x3cd   : > { %v1264_v35 = vpop.permute.xlu0 %1263  ;;  %v1262_v36 = vpop.permute.xlu1 %1261  ;;  %1564 = vmatpush1.bf16.msra.mxu1 %v1265_v10 }
 0x3ce   : > { %v1268_v41 = vsel %vm3223_vm3, %v1262_v36, %v1264_v35  ;;  %v1267_v38 = vsel %vm3224_vm4, %v2147_v11, %v1262_v36 }
 0x3cf   : > { %1565 = vmatprep.subr.bf16.mxu1 %v1268_v41 }
 0x3d1   : > { %v2150_v13 = vpop.permute.xlu0 %2149  ;;  %v1306_v18 = vpop.permute.xlu1 %1305  ;;  %1566 = vmatpush1.bf16.msra.mxu1 %v1267_v38 }
 0x3d2   : > { %1567 = vmatprep.subr.bf16.mxu1 %v2782_v12  ;;  %v2151_v19 = vunpack.i.l.bf16 %v2150_v13  ;;  %v2152_v22 = vunpack.i.h.bf16 %v2150_v13 }
 0x3d4   : > { %v1316_v56 = vsel %vm579_vm12, %v1306_v18, %v2151_v19 }
 0x3d5   : > { %v1348_v52 = vpop.permute.xlu0 %1347  ;;  %v1304_v46 = vpop.permute.xlu1 %1303  ;;  %1568 = vmatpush1.bf16.msra.mxu1 %v2780_v51 }
 0x3d6   : > { %1569 = vmatprep.subr.bf16.mxu1 %v2802_v0  ;;  %v1315_v20 = vsel %vm579_vm12, %v1304_v46, %v1306_v18 }
 0x3d9   : > { %v1312_v21 = vpop.permute.xlu0 %1311  ;;  %v2155_v49 = vpop.permute.xlu1 %2154  ;;  %1570 = vmatpush1.bf16.msra.mxu1 %v2800_v63 }
 0x3da   : > { %1571 = vmatprep.subr.bf16.mxu1 %v1316_v56  ;;  %v2156_v17 = vunpack.i.l.bf16 %v2155_v49  ;;  %v1318_v14 = vsel %vm579_vm12, %v1312_v21, %v2152_v22  ;;  %v2157_v23 = vunpack.i.h.bf16 %v2155_v49 }
 0x3dc   : > { %v1358_v63 = vsel %vm527_vm9, %v1348_v52, %v2156_v17 }
 0x3dd   : > { %v1346_v15 = vpop.permute.xlu0 %1345  ;;  %v1310_v12 = vpop.permute.xlu1 %1309  ;;  %1572 = vmatpush1.bf16.msra.mxu1 %v1315_v20 }
 0x3de   : > { %1573 = vmatprep.subr.bf16.mxu1 %v1318_v14  ;;  %v1317_v51 = vsel %vm579_vm12, %v1310_v12, %v1312_v21  ;;  %v1357_v27 = vsel %vm527_vm9, %v1346_v15, %v1348_v52  ;;  %vm3225_vm12 = vcmask 916480  }
 0x3df   : > { %vm3226_vm2 = vmmov %vm3225_vm12 }
 0x3e0   : > { %vm3227_vm5 = vmmov %vm3226_vm2 }
 0x3e1   : > { %v1386_v0 = vpop.permute.xlu0 %1385  ;;  %v1384_v24 = vpop.permute.xlu1 %1383  ;;  %1574 = vmatpush1.bf16.msra.mxu1 %v1317_v51  ;;  %vm3228_vm7 = vmmov %vm3226_vm2 }
 0x3e2   : > { %1575 = vmatprep.subr.bf16.mxu1 %v1358_v63  ;;  %v1394_v42 = vsel %vm3225_vm12, %v1384_v24, %v1386_v0 }
 0x3e5   : > { %v1352_v28 = vpop.permute.xlu0 %1351  ;;  %v1354_v29 = vpop.permute.xlu1 %1353  ;;  %1576 = vmatpush1.bf16.msra.mxu1 %v1357_v27 }
 0x3e6   : > { %v1360_v31 = vsel %vm527_vm9, %v1354_v29, %v2157_v23  ;;  %v1359_v32 = vsel %vm527_vm9, %v1352_v28, %v1354_v29 }
 0x3e7   : > { %1577 = vmatprep.subr.bf16.mxu1 %v1360_v31 }
 0x3e9   : > { %v1390_v37 = vpop.permute.xlu0 %1389  ;;  %v1382_v40 = vpop.permute.xlu1 %1381  ;;  %1578 = vmatpush1.bf16.msra.mxu1 %v1359_v32 }
 0x3ea   : > { %1579 = vmatprep.subr.bf16.mxu1 %v1394_v42  ;;  %v1393_v43 = vsel %vm3226_vm2, %v1382_v40, %v1384_v24 }
 0x3ed   : > { %v1388_v44 = vpop.permute.xlu0 %1387  ;;  %v1392_v45 = vpop.permute.xlu1 %1391  ;;  %1580 = vmatpush1.bf16.msra.mxu1 %v1393_v43 }
 0x3ee   : > { %v1396_v47 = vsel %vm3227_vm5, %v1390_v37, %v1392_v45  ;;  %v1395_v48 = vsel %vm3228_vm7, %v1388_v44, %v1390_v37 }
 0x3ef   : > { %1581 = vmatprep.subr.bf16.mxu1 %v1396_v47 }
 0x3f1   : > { %v1428_v16 = vpop.permute.xlu0 %1427  ;;  %v1426_v6 = vpop.permute.xlu1 %1425  ;;  %1582 = vmatpush1.bf16.msra.mxu1 %v1395_v48 }
 0x3f2   : > { %v1436_v53 = vsel %vm428_vm6, %v1426_v6, %v1428_v16 }
 0x3f3   : > { %1604 = vmatprep.subr.bf16.mxu1 %v1436_v53 }
 0x3f4   : > { %1584 = vmatmul.mubr.bf16.vlgmr.msra.gmra.mrb[0].mxu1 %v2166_v50 }
 0x3f5   : > { %v1432_v54 = vpop.permute.xlu0 %1431  ;;  %v1424_v55 = vpop.permute.xlu1 %1423  ;;  %1593 = vmatprep.mubr.bf16.mxu1 %v2169_v9 }
 0x3f6   : > { %v1435_v57 = vsel %vm428_vm6, %v1424_v55, %v1426_v6 }
 0x3f7   : > { %1605 = vmatpush1.bf16.msra.mxu1 %v1435_v57 }
 0x3f9   : > { %v1430_v59 = vpop.permute.xlu0 %1429  ;;  %v1434_v60 = vpop.permute.xlu1 %1433 }
 0x3fa   : > { %v1437_v33 = vsel %vm428_vm6, %v1430_v59, %v1432_v54  ;;  %v1438_v30 = vsel %vm428_vm6, %v1432_v54, %v1434_v60  ;;  %vm1753_vm6 = vcmask 15360  }
 0x3fb   : > { %1606 = vmatprep.subr.bf16.mxu1 %v1438_v30 }
 0x3fc   : > { %1594 = vmatmul.mubr.bf16.gmra.mrb[4].mxu1 %v2171_v58 }
 0x3fd   : > { %1607 = vmatpush1.bf16.msra.mxu1 %v1437_v33  ;;  %1636 = vmatprep.mubr.bf16.mxu1 %v2313_v1 }
 0x404   : > { %1989 = vmatmul.mubr.msk.bf16.vlgmr.msra.gmra.mrb[0].mxu1 %vm914_vm0, %v2172_v61 }
 0x405   : > { %1646 = vmatprep.mubr.bf16.mxu1 %v2313_v1 }
 0x40a   : > { %v1498_v34 = vpop.permute.xlu1 %1497  ;;  %v1503_v4 = vpop.permute.xlu0 %1502 }
 0x40c   : > { %1990 = vmatmul.mubr.msk.bf16.gmra.mrb[4].mxu1 %vm914_vm0, %v2173_v62 }
 0x40e   : > { %v1508_v13 = vpop.permute.xlu1 %1507  ;;  %v1513_v21 = vpop.permute.xlu0 %1512 }
 0x4d7   : > { %v1638_v39 = vpop.f32.mrb[0].mxu1 }
 0x4d8   : > { %v2990_v2 = vadd.f32 %v1638_v39, %v1498_v34  ;;  %v1640_v3 = vpop.f32.mrb[1].mxu1 }
 0x4d9   : > { %v2992_v25 = vadd.f32 %v1640_v3, %v1498_v34  ;;  %v1642_v26 = vpop.f32.mrb[2].mxu1 }
 0x4da   : > { %v2994_v5 = vadd.f32 %v1642_v26, %v1503_v4  ;;  %v1644_v8 = vpop.f32.mrb[3].mxu1  ;;  %v1673_v1 = vmul.f32 %v2990_v2, %v2990_v2 }
 0x4db   : > { %v1674_v10 = vmul.f32 %v2992_v25, %v2992_v25  ;;  %v3000_v35 = vadd.f32 %v1644_v8, %v1503_v4  ;;  %v1657_v36 = vadd.f32 %v2992_v25, %v2990_v2 }
 0x4dc   : > { %v1675_v11 = vmul.f32 %v2994_v5, %v2994_v5 }
 0x4dd   : > { %v1676_v41 = vmul.f32 %v3000_v35, %v3000_v35  ;;  %1658 = vadd.xlane.f32.xlu1 %v1657_v36  ;;  %v1660_v38 = vadd.f32 %v3000_v35, %v2994_v5  ;;  %v1681_v19 = vadd.f32 %v1674_v10, %v1673_v1 }
 0x4df   : > { %v1648_v18 = vpop.f32.mrb[4].mxu1  ;;  %1661 = vadd.xlane.f32.xlu0 %v1660_v38  ;;  %v1684_v22 = vadd.f32 %v1676_v41, %v1675_v11 }
 0x4e0   : > { %v3010_v52 = vadd.f32 %v1648_v18, %v1508_v13  ;;  %v1650_v46 = vpop.f32.mrb[5].mxu1 }
 0x4e1   : > { %v3012_v49 = vadd.f32 %v1650_v46, %v1508_v13  ;;  %v1652_v56 = vpop.f32.mrb[6].mxu1  ;;  %1682 = vadd.xlane.f32.xlu1 %v1681_v19 }
 0x4e2   : > { %v3014_v20 = vadd.f32 %v1652_v56, %v1513_v21  ;;  %v1654_v17 = vpop.f32.mrb[7].mxu1  ;;  %v1677_v12 = vmul.f32 %v3010_v52, %v3010_v52 }
 0x4e3   : > { %v3016_v15 = vadd.f32 %v1654_v17, %v1513_v21  ;;  %1685 = vadd.xlane.f32.xlu0 %v1684_v22  ;;  %v1678_v14 = vmul.f32 %v3012_v49, %v3012_v49  ;;  %v1663_v24 = vadd.f32 %v3012_v49, %v3010_v52 }
 0x4e4   : > { %v1679_v51 = vmul.f32 %v3014_v20, %v3014_v20 }
 0x4e5   : > { %v1680_v0 = vmul.f32 %v3016_v15, %v3016_v15  ;;  %v1666_v63 = vadd.f32 %v3016_v15, %v3014_v20  ;;  %v1687_v23 = vadd.f32 %v1678_v14, %v1677_v12  ;;  %v1746_v12 = vld [vmem:[%s3186_s5 + $0x8] sm:$0xff] }
 0x4e7   : > { %1664 = vadd.xlane.f32.xlu0 %v1663_v24  ;;  %1667 = vadd.xlane.f32.xlu1 %v1666_v63  ;;  %v1690_v27 = vadd.f32 %v1680_v0, %v1679_v51  ;;  %v1745_v51 = vld [vmem:[%s3186_s5] sm:$0xff]  ;;  %v1747_v63 = vld [vmem:[%s3186_s5 + $0x10] sm:$0xff] }
 0x4eb   : > { %1688 = vadd.xlane.f32.xlu0 %v1687_v23  ;;  %1691 = vadd.xlane.f32.xlu1 %v1690_v27 }
 0x56a   : > { %v1659_v28 = vpop.xlane.xlu1 %1658 }
 0x56b   : > { %v1669_v29 = vmul.f32 0.00390625, %v1659_v28 }
 0x56c   : > { %v1662_v31 = vpop.xlane.xlu0 %1661 }
 0x56d   : > { %v1670_v32 = vmul.f32 0.00390625, %v1662_v31  ;;  %v1697_v40 = vmul.f32 %v1669_v29, %v1669_v29  ;;  %v1705_v39 = vsub.f32 %v2990_v2, %v1669_v29  ;;  %v1706_v3 = vsub.f32 %v2992_v25, %v1669_v29  ;;  %v1748_v29 = vld [vmem:[%s3186_s5 + $0x18] sm:$0xff] }
 0x56e   : > { %v1683_v37 = vpop.xlane.xlu1 %1682 }
 0x56f   : > { %v1693_v42 = vmul.f32 0.00390625, %v1683_v37  ;;  %v1698_v45 = vmul.f32 %v1670_v32, %v1670_v32  ;;  %v1707_v26 = vsub.f32 %v2994_v5, %v1670_v32  ;;  %v1708_v8 = vsub.f32 %v3000_v35, %v1670_v32 }
 0x570   : > { %v1686_v43 = vpop.xlane.xlu0 %1685 }
 0x571   : > { %v1701_v44 = vsub.f32 %v1693_v42, %v1697_v40  ;;  %v1694_v47 = vmul.f32 0.00390625, %v1686_v43 }
 0x573   : > { %v1713_v48 = vadd.f32 1e-05, %v1701_v44  ;;  %v1702_v50 = vsub.f32 %v1694_v47, %v1698_v45 }
 0x574   : > { %v1665_v16 = vpop.xlane.xlu0 %1664  ;;  %v1668_v6 = vpop.xlane.xlu1 %1667 }
 0x575   : > { %2182 = vrsqrt.f32 %v1713_v48  ;;  %v1714_v9 = vadd.f32 1e-05, %v1702_v50  ;;  %v1671_v53 = vmul.f32 0.00390625, %v1665_v16  ;;  %v1672_v54 = vmul.f32 0.00390625, %v1668_v6 }
 0x577   : > { %2184 = vrsqrt.f32 %v1714_v9  ;;  %v1699_v58 = vmul.f32 %v1671_v53, %v1671_v53  ;;  %v1700_v60 = vmul.f32 %v1672_v54, %v1672_v54  ;;  %v1709_v5 = vsub.f32 %v3010_v52, %v1671_v53 }
 0x578   : > { %v1689_v55 = vpop.xlane.xlu0 %1688  ;;  %v1692_v57 = vpop.xlane.xlu1 %1691  ;;  %v1710_v35 = vsub.f32 %v3012_v49, %v1671_v53  ;;  %v1711_v13 = vsub.f32 %v3014_v20, %v1672_v54  ;;  %v1712_v18 = vsub.f32 %v3016_v15, %v1672_v54  ;;  %v1767_v54 = vld [vmem:[%s3187_s6] sm:$0x1] }
 0x579   : > { %v1695_v59 = vmul.f32 0.00390625, %v1689_v55  ;;  %v1696_v33 = vmul.f32 0.00390625, %v1692_v57 }
 0x57b   : > { %v1703_v30 = vsub.f32 %v1695_v59, %v1699_v58  ;;  %v1704_v61 = vsub.f32 %v1696_v33, %v1700_v60  ;;  %v1771_v59 = vld [vmem:[%s3188_s7 + $0x8] sm:$0xff]  ;;  %v1770_v60 = vld [vmem:[%s3188_s7] sm:$0xff] }
 0x57d   : > { %v1715_v62 = vadd.f32 1e-05, %v1703_v30  ;;  %v1716_v34 = vadd.f32 1e-05, %v1704_v61  ;;  %v1773_v30 = vld [vmem:[%s3188_s7 + $0x18] sm:$0xff]  ;;  %v1772_v61 = vld [vmem:[%s3188_s7 + $0x10] sm:$0xff] }
 0x57f   : > { %v2183_v4 = vpop.eup %2182  ;;  %2186 = vrsqrt.f32 %v1715_v62 }
 0x580   : > { %2188 = vrsqrt.f32 %v1716_v34  ;;  %v3034_v1 = vmul.f32 %v2183_v4, %v1705_v39  ;;  %v3036_v10 = vmul.f32 %v2183_v4, %v1706_v3 }
 0x581   : > { %v2185_v36 = vpop.eup %2184 }
 0x582   : > { %v1729_v11 = vadd.f32 %v3036_v10, %v3034_v1  ;;  %v3040_v41 = vmul.f32 %v2185_v36, %v1707_v26  ;;  %v3042_v2 = vmul.f32 %v2185_v36, %v1708_v8  ;;  %v1795_v36 = vld [vmem:[%s3189_s8 + $0x8] sm:$0xff] }
 0x584   : > { %1730 = vadd.xlane.f32.xlu0 %v1729_v11  ;;  %v1732_v25 = vadd.f32 %v3042_v2, %v3040_v41  ;;  %v1794_v11 = vld [vmem:[%s3189_s8] sm:$0xff] }
 0x586   : > { %1733 = vadd.xlane.f32.xlu1 %v1732_v25 }
 0x589   : > { %v2187_v38 = vpop.eup %2186 }
 0x58a   : > { %v2189_v19 = vpop.eup %2188  ;;  %v3050_v46 = vmul.f32 %v2187_v38, %v1709_v5  ;;  %v3052_v21 = vmul.f32 %v2187_v38, %v1710_v35 }
 0x58b   : > { %v3054_v56 = vmul.f32 %v2189_v19, %v1711_v13  ;;  %v3056_v22 = vmul.f32 %v2189_v19, %v1712_v18  ;;  %v1797_v13 = vld [vmem:[%s3189_s8 + $0x18] sm:$0xff]  ;;  %v1796_v18 = vld [vmem:[%s3189_s8 + $0x10] sm:$0xff] }
 0x58c   : > { %v1735_v17 = vadd.f32 %v3052_v21, %v3050_v46 }
 0x58d   : > { %v1738_v52 = vadd.f32 %v3056_v22, %v3054_v56 }
 0x58e   : > { %1736 = vadd.xlane.f32.xlu0 %v1735_v17 }
 0x58f   : > { %1739 = vadd.xlane.f32.xlu1 %v1738_v52 }
 0x611   : > { %v1731_v49 = vpop.xlane.xlu0 %1730 }
 0x612   : > { %v1741_v14 = vmul.f32 0.00390625, %v1731_v49 }
 0x613   : > { %v1734_v20 = vpop.xlane.xlu1 %1733 }
 0x614   : > { %v1742_v15 = vmul.f32 0.00390625, %v1734_v20  ;;  %v1749_v24 = vmul.f32 %v1745_v51, %v1741_v14 }
 0x616   : > { %v1750_v0 = vmul.f32 %v1746_v12, %v1742_v15  ;;  %v1754_v37 = vsel %vm1753_vm6, %v1749_v24, 0.0 }
 0x618   : > { %v1755_v27 = vsel %vm1753_vm6, %v1750_v0, 0.0 }
 0x619   : > { %v1756_v42 = vadd.f32 %v1755_v27, %v1754_v37 }
 0x61b   : > { %v1737_v23 = vpop.xlane.xlu0 %1736 }
 0x61c   : > { %v1743_v28 = vmul.f32 0.00390625, %v1737_v23  ;;  %v1740_v31 = vpop.xlane.xlu1 %1739 }
 0x61d   : > { %v1744_v32 = vmul.f32 0.00390625, %v1740_v31 }
 0x61e   : > { %v1751_v40 = vmul.f32 %v1747_v63, %v1743_v28 }
 0x61f   : > { %v1752_v43 = vmul.f32 %v1748_v29, %v1744_v32 }
 0x620   : > { %v1757_v44 = vsel %vm1753_vm6, %v1751_v40, 0.0 }
 0x621   : > { %v1758_v45 = vadd.f32 %v1757_v44, %v1756_v42  ;;  %v1759_v47 = vsel %vm1753_vm6, %v1752_v43, 0.0 }
 0x623   : > { %v1760_v48 = vadd.f32 %v1759_v47, %v1758_v45 }
 0x625   : > { %v1761_v50 = vrot.slane %v1760_v48, 4 }
 0x627   : > { %v1762_v16 = vadd.f32 %v1761_v50, %v1760_v48  ;;  %v2206_v50 = vld [vmem:[%s2476_s17 + $0x10] sm:$0xff] }
 0x629   : > { %v1763_v6 = vrot.slane %v1762_v16, 2 }
 0x62b   : > { %v1764_v9 = vadd.f32 %v1763_v6, %v1762_v16  ;;  %v2207_v6 = vld [vmem:[%s2476_s17 + $0x18] sm:$0xff] }
 0x62d   : > { %v1765_v53 = vrot.slane %v1764_v9, 1 }
 0x62f   : > { %v1766_v55 = vadd.f32 %v1765_v53, %v1764_v9  ;;  %v2208_v53 = vld [vmem:[%s2476_s17] sm:$0xff] }
 0x631   : > { %v1768_v57 = vadd.f32 %v1767_v54, %v1766_v55  ;;  %v2209_v55 = vld [vmem:[%s2476_s17 + $0x8] sm:$0xff] }
 0x633   : > { %v1769_v58 = vmax.f32 %v1768_v57, 0.0 }
 0x635   : > { %v1777_v33 = vrot.slane %v1769_v58, %v2459_v7 }
 0x637   : > { %v1779_v62 = vmul.f32 %v1777_v33, %v1771_v59  ;;  %v1778_v34 = vmul.f32 %v1777_v33, %v1770_v60  ;;  %v1781_v4 = vmul.f32 %v1777_v33, %v1773_v30  ;;  %v1780_v26 = vmul.f32 %v1777_v33, %v1772_v61 }
 0x639   : > { %v1785_v39 = vsel %vm1753_vm6, %v1779_v62, 0.0  ;;  %v1782_v3 = vsel %vm1753_vm6, %v1778_v34, 0.0  ;;  %v1791_v7 = vsel %vm1753_vm6, %v1781_v4, 0.0  ;;  %v1788_v8 = vsel %vm1753_vm6, %v1780_v26, 0.0  ;;  %v2210_v62 = vld [vmem:[%s2476_s17 + $0x20] sm:$0xff] }
 0x63a   : > { %1786 = vadd.xlane.f32.xlu1 %v1785_v39  ;;  %1783 = vadd.xlane.f32.xlu0 %v1782_v3  ;;  %v2211_v39 = vld [vmem:[%s2476_s17 + $0x28] sm:$0xff] }
 0x63e   : > { %1792 = vadd.xlane.f32.xlu1 %v1791_v7  ;;  %1789 = vadd.xlane.f32.xlu0 %v1788_v8 }
 0x6c7   : > { %v1787_v25 = vpop.xlane.xlu1 %1786  ;;  %v1784_v5 = vpop.xlane.xlu0 %1783 }
 0x6c8   : > { %v1799_v35 = vadd.f32 %v1795_v36, %v1787_v25  ;;  %v1798_v38 = vadd.f32 %v1794_v11, %v1784_v5 }
 0x6ca   : > { %v1992_v19 = vmul.f32 -1.442695, %v1799_v35  ;;  %v1991_v17 = vmul.f32 -1.442695, %v1798_v38 }
 0x6cb   : > { %v1793_v52 = vpop.xlane.xlu1 %1792  ;;  %v1790_v49 = vpop.xlane.xlu0 %1789 }
 0x6cc   : > { %2190 = vpow2.f32 %v1992_v19  ;;  %v1801_v20 = vadd.f32 %v1797_v13, %v1793_v52  ;;  %v1800_v15 = vadd.f32 %v1796_v18, %v1790_v49 }
 0x6cd   : > { %2192 = vpow2.f32 %v1991_v17 }
 0x6ce   : > { %v1994_v12 = vmul.f32 -1.442695, %v1801_v20  ;;  %v1993_v14 = vmul.f32 -1.442695, %v1800_v15 }
 0x6d0   : > { %2194 = vpow2.f32 %v1994_v12 }
 0x6d1   : > { %2196 = vpow2.f32 %v1993_v14 }
 0x6d6   : > { %v2191_v51 = vpop.eup %2190 }
 0x6d7   : > { %v2193_v0 = vpop.eup %2192  ;;  %v1815_v24 = vadd.f32 1.0, %v2191_v51 }
 0x6d8   : > { %v1814_v63 = vadd.f32 1.0, %v2193_v0 }
 0x6d9   : > { %2198 = vrcp.f32 %v1815_v24 }
 0x6da   : > { %v2195_v23 = vpop.eup %2194  ;;  %2200 = vrcp.f32 %v1814_v63 }
 0x6db   : > { %v2197_v27 = vpop.eup %2196  ;;  %v1817_v28 = vadd.f32 1.0, %v2195_v23 }
 0x6dc   : > { %v1816_v29 = vadd.f32 1.0, %v2197_v27 }
 0x6dd   : > { %2202 = vrcp.f32 %v1817_v28 }
 0x6de   : > { %2204 = vrcp.f32 %v1816_v29 }
 0x6e3   : > { %v2199_v31 = vpop.eup %2198 }
 0x6e4   : > { %v2201_v32 = vpop.eup %2200  ;;  %1833 = vperm.xlu1 %2127, %v2199_v31  }
 0x6e5   : > { %1828 = vperm.xlu0 %2126, %v2201_v32  }
 0x6e7   : > { %v2203_v37 = vpop.eup %2202 }
 0x6e8   : > { %v2205_v40 = vpop.eup %2204 }
 0x6e9   : > { %1843 = vperm.xlu0 %2126, %v2203_v37   ;;  %1838 = vperm.xlu1 %2127, %v2205_v40  }
 0x763   : > { %v1834_v42 = vpop.permute.xlu1 %1833 }
 0x764   : > { %v1848_v43 = vmul.f32 %v1834_v42, %v3040_v41  ;;  %v1849_v44 = vmul.f32 %v1834_v42, %v3042_v2  ;;  %v1829_v45 = vpop.permute.xlu0 %1828 }
 0x765   : > { %v1846_v47 = vmul.f32 %v1829_v45, %v3034_v1  ;;  %v1847_v48 = vmul.f32 %v1829_v45, %v3036_v10 }
 0x766   : > { %v1856_v16 = vadd.f32 %v2206_v50, %v1848_v43  ;;  %v1857_v9 = vadd.f32 %v2207_v6, %v1849_v44 }
 0x767   : > { %v1854_v54 = vadd.f32 %v2208_v53, %v1846_v47  ;;  %v1855_v57 = vadd.f32 %v2209_v55, %v1847_v48 }
 0x768   : > { %v1864_v58 = vmax.f32 %v1856_v16, 0.0  ;;  %v1865_v59 = vmax.f32 %v1857_v9, 0.0  ;;  %v1839_v41 = vpop.permute.xlu1 %1838  ;;  %v1844_v2 = vpop.permute.xlu0 %1843 }
 0x769   : > { %v1862_v60 = vmax.f32 %v1854_v54, 0.0  ;;  %v1863_v33 = vmax.f32 %v1855_v57, 0.0  ;;  %v1850_v1 = vmul.f32 %v1839_v41, %v3050_v46  ;;  %v1851_v10 = vmul.f32 %v1839_v41, %v3052_v21  ;;  %v2212_v46 = vld [vmem:[%s2476_s17 + $0x30] sm:$0xff]  ;;  %v2213_v21 = vld [vmem:[%s2476_s17 + $0x38] sm:$0xff]  ;;  %s2242_s17 = scalar_lea.vmem %s3135_s21, 1024 }
 0x76a   : > { %1872 = vst [vmem:[%s340_s22 + $0x10] sm:$0xff] %v1864_v58  ;;  %1873 = vst [vmem:[%s340_s22 + $0x18] sm:$0xff] %v1865_v59  ;;  %v1852_v30 = vmul.f32 %v1844_v2, %v3054_v56  ;;  %v1853_v61 = vmul.f32 %v1844_v2, %v3056_v22  ;;  %p2243_p6 = scmp.ne.s32.totalorder %s3135_s21, %s2242_s17  ;;  %p2250_p3 = scmp.lt.s32.totalorder %s2248_s27, %s2242_s17 }
 0x76b   : > { %1870 = vst [vmem:[%s340_s22] sm:$0xff] %v1862_v60  ;;  %1871 = vst [vmem:[%s340_s22 + $0x8] sm:$0xff] %v1863_v33  ;;  %v1858_v34 = vadd.f32 %v2210_v62, %v1850_v1  ;;  %v1859_v3 = vadd.f32 %v2211_v39, %v1851_v10 }
 0x76c   : > { %v1860_v4 = vadd.f32 %v2212_v46, %v1852_v30  ;;  %v1861_v26 = vadd.f32 %v2213_v21, %v1853_v61  ;;  %p2244_p10 = pnand %p2243_p6, %p3229_p9  ;;  %p2251_p4 = por %p2250_p3, %p2249_p2 }
 0x76d   : > { %v1866_v7 = vmax.f32 %v1858_v34, 0.0  ;;  %v1867_v8 = vmax.f32 %v1859_v3, 0.0 }
 0x76e   : > { %v1868_v56 = vmax.f32 %v1860_v4, 0.0  ;;  %v1869_v22 = vmax.f32 %v1861_v26, 0.0  ;;  %p2245_p12 = pneg %p2244_p10 }
 0x76f   : > { %1874 = vst [vmem:[%s340_s22 + $0x20] sm:$0xff] %v1866_v7  ;;  %1875 = vst [vmem:[%s340_s22 + $0x28] sm:$0xff] %v1867_v8 }
 0x770   : > { %1876 = vst [vmem:[%s340_s22 + $0x30] sm:$0xff] %v1868_v56  ;;  %1877 = vst [vmem:[%s340_s22 + $0x38] sm:$0xff] %v1869_v22  ;;  %p2252_p7 = pnand %p2251_p4, %p2245_p12 }
 0x772   : > { %2255 = shalt.err (!%p2252_p7)
}
 0x773   : > { %s2256_s23 = scalar_lea.hbm %s3133_s16, 1024  ;;  %s2260_s26 = scalar_lea.hbm %s3190_s9, 2048 }
 0x774   : > { %p2257_p8 = scmp.ne.s32.totalorder %s3133_s16, %s2256_s23  ;;  %p2261_p0 = scmp.lt.u32.totalorder %s3133_s16, %s3190_s9 }
 0x775   : > { %p2262_p1 = scmp.lt.u32.totalorder %s2260_s26, %s2256_s23  ;;  %p2264_p6 = scmp.lt.u32.totalorder %s2256_s23, %s3133_s16 }
 0x776   : > { %p2258_p11 = pnand %p2257_p8, %p3229_p9 }
 0x777   : > { %p2263_p5 = por %p2262_p1, %p2261_p0 }
 0x778   : > { %p2259_p13 = pneg %p2258_p11 }
 0x779   : > { %p2265_p10 = por %p2264_p6, %p2263_p5 }
 0x77b   : > { %p2266_p12 = pnand %p2265_p10, %p2259_p13 }
 0x77d   : > { %2269 = shalt.err (!%p2266_p12)
}
 0x77e   : > { %s2323_s17 = smov 256  }
 0x77f   : > { %2038 = dma.vmem_to_hbm [thread:$0]  (%p3229_p9), %s3135_s21, 1024, %s3133_s16, %s3139_s13, %s2323_s17, %s2323_s17, %s2320_s28  }
 0x780 PF: > { %p2050_p2 = scmp.ge.s32.totalorder %s2308_s12, 2  ;;  %s1907_s14 = sand.u32 1, %s2296_s30  }
 0x781   : > { %p3230_p3 = scmp.ne.s32.totalorder %s3206_s20, 0  ;;  %s1908_s27 = scalar_lea.sflag [#allocation6], %s1907_s14 }
 0x783   : > { %p2045_p4 = pnand %p2050_p2, %p3230_p3 }
 0x785   : > { %2291 = dma.done.wait (!%p2045_p4), %s1908_s27, 1024  }
 0x786   : > { %2293 = vsyncadd (!%p2045_p4), %s1908_s27, 4294966272  ;;  %p20_p7 = scmp.ge.s32.totalorder %s2399_s15, 4   ;;  %s3231_s30 = smov %s2300_s10 }
 0x787   : > { %s3232_s10 = smov %s2304_s11  ;;  %s3233_s11 = smov %s2410_s18 }
 0x788   : > { %s3234_s12 = smov %s2399_s15  ;;  %22 = sbr.rel (!%p20_p7) target bundleno = 4 (0x4), region = 96 }
 0x78f   :  { %1913 = vsyncpa [#allocation5], 1 }
 0x790   :  { %1915 = vsyncpa [#allocation5 + $0x1], 1 }
 0x791   :  { %1916 = vsyncpa [#allocation6], 1 }
 0x792   :  { %1918 = vsyncpa [#allocation6 + $0x1], 1 }

</bundles_post_ra>
